<compile_context>
chip_gen: v6e
topology: v6e:2x2x1
jax: 0.10.0
libtpu: 0.0.40
codegen_flags: <defaults>
</compile_context>

<pallas_src>
import functools

import jax
import jax.numpy as jnp
from jax.experimental import pallas as pl
from jax.experimental.pallas import tpu as pltpu


def _round_up(x, m):
    return (x + m - 1) // m * m


# ----------------------------------------------------------------------------
# Parameters (torch-like layout)
# ----------------------------------------------------------------------------
def init_params(key, vocab_size, embed_dim, num_classes, hidden_dim,
                kernel_sizes, num_filters):
    ks = iter(jax.random.split(key, 4 + 2 * len(kernel_sizes) + 8))
    nrm = lambda k, s: (0.1 * jax.random.normal(k, s)).astype(jnp.float32)

    params = {"embedding": nrm(next(ks), (vocab_size, embed_dim))}

    # Conv2d(1, F, (k, E)) weights stored as (k, E, F); bias (F,)
    params["convs"] = []
    for k in kernel_sizes:
        params["convs"].append((nrm(next(ks), (k, embed_dim, num_filters)),
                                nrm(next(ks), (num_filters,))))

    # Bidirectional LSTM (gate order i,f,g,o); weights pre-transposed to
    # (E, 4H) / (H, 4H); torch's b_ih + b_hh folded into one bias / direction.
    H4 = 4 * hidden_dim
    for tag in ("f", "b"):
        params[f"w_ih_{tag}"] = nrm(next(ks), (embed_dim, H4))
        params[f"w_hh_{tag}"] = nrm(next(ks), (hidden_dim, H4))
        params[f"b_{tag}"] = nrm(next(ks), (H4,))

    fc_in = len(kernel_sizes) * num_filters + 2 * hidden_dim
    params["fc_w"] = nrm(next(ks), (fc_in, num_classes))
    params["fc_b"] = nrm(next(ks), (num_classes,))
    return params


# ----------------------------------------------------------------------------
# One-time packing step (runs once, OUTSIDE the jitted forward)
# ----------------------------------------------------------------------------
def prepare_params(params):
    E = int(params["embedding"].shape[1])
    kernel_sizes = tuple(int(w.shape[0]) for (w, _) in params["convs"])
    F = int(params["convs"][0][0].shape[2])
    H = int(params["w_hh_f"].shape[0])
    NC = int(params["fc_b"].shape[0])
    nb = len(kernel_sizes)
    k_max = max(kernel_sizes)

    Cp = _round_up(nb * F, 128)                  # conv feature lanes
    NCp = _round_up(NC, 128)                     # logit lanes
    BW = max(Cp, NCp, _round_up(4 * H, 128))     # shared bias-buffer width
    f32 = jnp.float32

    # Merged conv weights: tap j -> rows [j*E:(j+1)*E], branch i -> cols [i*F:(i+1)*F]
    wconv = jnp.zeros((k_max * E, Cp), f32)
    bconv = jnp.zeros((BW,), f32)
    for i, (w, b) in enumerate(params["convs"]):
        k = int(w.shape[0])
        wconv = wconv.at[:k * E, i * F:(i + 1) * F].set(w.reshape(k * E, F).astype(f32))
        bconv = bconv.at[i * F:(i + 1) * F].set(b.astype(f32))

    # [fwd | bwd] LSTM input->gate weights (E, 8H); forward recurrent weights.
    wih = jnp.concatenate([params["w_ih_f"], params["w_ih_b"]], axis=1).astype(f32)
    whh_f = params["w_hh_f"].astype(f32)

    # All biases in one buffer: row 0 = conv, 1 = lstm fwd, 2 = lstm bwd, 3 = fc.
    bias = jnp.zeros((4, BW), f32)
    bias = bias.at[0, :].set(bconv)
    bias = bias.at[1, :4 * H].set(params["b_f"].astype(f32))
    bias = bias.at[2, :4 * H].set(params["b_b"].astype(f32))
    bias = bias.at[3, :NC].set(params["fc_b"].astype(f32))

    # Stacked FC weights: rows [0:Cp] cnn, [Cp:Cp+H] h_fwd, [Cp+H:Cp+2H] h_bwd.
    f3 = nb * F
    fcw = params["fc_w"].astype(f32)
    fcw_all = jnp.zeros((Cp + 2 * H, NCp), f32)
    fcw_all = fcw_all.at[:f3, :NC].set(fcw[:f3])
    fcw_all = fcw_all.at[Cp:Cp + H, :NC].set(fcw[f3:f3 + H])
    fcw_all = fcw_all.at[Cp + H:Cp + 2 * H, :NC].set(fcw[f3 + H:])

    buffers = dict(embedding=params["embedding"].astype(f32), wconv=wconv,
                   wih=wih, whh_f=whh_f, fcw=fcw_all, bias=bias)
    meta = dict(E=E, H=H, F=F, NC=NC, nb=nb, k_max=k_max, Cp=Cp, NCp=NCp, BW=BW,
                kernel_sizes=kernel_sizes)
    return buffers, meta


# ----------------------------------------------------------------------------
# Fused forward: convs + ReLU + max-pool + BLSTM(last step) + FC
# ----------------------------------------------------------------------------
def parallel_cnn_blstm_forward(buffers, x_tokens, *, meta):
    B, T = x_tokens.shape
    E, H, F, NC = meta["E"], meta["H"], meta["F"], meta["NC"]
    nb, k_max = meta["nb"], meta["k_max"]
    Cp, NCp, BW = meta["Cp"], meta["NCp"], meta["BW"]
    kernel_sizes = meta["kernel_sizes"]
    assert T >= k_max, "sequence shorter than largest conv kernel"

    Bp = _round_up(B, 8)
    Tpad = T + k_max - 1

    # Embedding gather (XLA), pad batch to 8 sublanes and time by k_max-1 zeros,
    # then time-major flatten: row t*Bp + b.
    # TODO(synk): embedding gather stays in XLA; move in-kernel (scalar-prefetched
    # ids + row DMA) only when B*T*E makes the HBM round-trip matter.
    emb = jnp.take(buffers["embedding"], x_tokens, axis=0)            # (B, T, E)
    emb = jnp.pad(emb, ((0, Bp - B), (0, k_max - 1), (0, 0)))         # (Bp, Tpad, E)
    xt = jnp.transpose(emb, (1, 0, 2)).reshape(Tpad * Bp, E)          # (Tpad*Bp, E)

    def kernel(xt_ref, wconv_ref, wih_ref, whh_ref, fcw_ref, bias_ref,
               out_ref, gx_ref):
        f32 = jnp.float32

        # ---- CNN branches: in-kernel im2col = k_max shifted matmuls ----
        acc = jnp.dot(xt_ref[0:T * Bp, :], wconv_ref[0:E, :],
                      preferred_element_type=f32)
        for j in range(1, k_max):
            acc = acc + jnp.dot(xt_ref[j * Bp:(j + T) * Bp, :],
                                wconv_ref[j * E:(j + 1) * E, :],
                                preferred_element_type=f32)
        conv = jnp.maximum(acc + bias_ref[0:1, 0:Cp], 0.0)            # (T*Bp, Cp)

        # Global max-pool over time: elementwise max over T (Bp, Cp) tiles.
        # Partial windows are masked to 0 (valid since ReLU output >= 0);
        # validity is static per (t, branch), so the mask only materializes on
        # the few partially-valid timesteps.
        col = jax.lax.broadcasted_iota(jnp.int32, (Bp, Cp), 1)
        cnn_feat = None
        for t in range(T):
            valid = [i for i, k in enumerate(kernel_sizes) if t <= T - k]
            if not valid:
                continue
            ct = conv[t * Bp:(t + 1) * Bp, :]
            if len(valid) < nb:
                ok = None
                for i in valid:
                    cond = (col >= i * F) & (col < (i + 1) * F)
                    ok = cond if ok is None else (ok | cond)
                ct = jnp.where(ok, ct, 0.0)
            cnn_feat = ct if cnn_feat is None else jnp.maximum(cnn_feat, ct)

        # ---- BLSTM forward: hoisted input projection into VMEM scratch ----
        gx_ref[...] = (jnp.dot(xt_ref[0:T * Bp, :], wih_ref[:, 0:4 * H],
                               preferred_element_type=f32)
                       + bias_ref[1:2, 0:4 * H])                      # (T*Bp, 4H)

        whh = whh_ref[...]
        h = jnp.zeros((Bp, H), f32)
        c = jnp.zeros((Bp, H), f32)
        for t in range(T):   # per-step VMEM loads keep gx out of the vreg file
            g = gx_ref[t * Bp:(t + 1) * Bp, :] + jnp.dot(
                h, whh, preferred_element_type=f32)
            i_g = jax.nn.sigmoid(g[:, 0 * H:1 * H])
            f_g = jax.nn.sigmoid(g[:, 1 * H:2 * H])
            g_g = jnp.tanh(g[:, 2 * H:3 * H])
            o_g = jax.nn.sigmoid(g[:, 3 * H:4 * H])
            c = f_g * c + i_g * g_g
            h = o_g * jnp.tanh(c)
        h_fwd = h

        # Backward direction at the last original timestep = its FIRST reverse
        # step from a zero state (module reads lstm_out[:, -1, :]), so
        # h0 @ W_hh_bwd == 0 and only the input projection + bias matter.
        gb = (jnp.dot(xt_ref[(T - 1) * Bp:T * Bp, :], wih_ref[:, 4 * H:8 * H],
                      preferred_element_type=f32)
              + bias_ref[2:3, 0:4 * H])
        i_b = jax.nn.sigmoid(gb[:, 0 * H:1 * H])
        g_b = jnp.tanh(gb[:, 2 * H:3 * H])
        o_b = jax.nn.sigmoid(gb[:, 3 * H:4 * H])
        h_bwd = o_b * jnp.tanh(i_b * g_b)

        # ---- final linear (stacked weight buffer, sublane-aligned slices) ----
        out = jnp.dot(cnn_feat, fcw_ref[0:Cp, :], preferred_element_type=f32)
        out = out + jnp.dot(h_fwd, fcw_ref[Cp:Cp + H, :],
                            preferred_element_type=f32)
        out = out + jnp.dot(h_bwd, fcw_ref[Cp + H:Cp + 2 * H, :],
                            preferred_element_type=f32)
        # TODO(synk): dropout implemented as identity (inference / eval mode).
        out_ref[...] = out + bias_ref[3:4, 0:NCp]

    flops = 2 * (k_max * T * Bp * E * Cp + T * Bp * E * 4 * H + Bp * E * 4 * H
                 + T * Bp * H * 4 * H + Bp * (Cp + 2 * H) * NCp)
    transcendentals = (T + 1) * Bp * 6 * H
    bytes_accessed = 4 * (Tpad * Bp * E + k_max * E * Cp + E * 8 * H
                          + H * 4 * H + (Cp + 2 * H) * NCp + 4 * BW + Bp * NCp)

    vmem = pl.BlockSpec(memory_space=pltpu.MemorySpace.VMEM)
    out = pl.pallas_call(
        kernel,
        out_shape=jax.ShapeDtypeStruct((Bp, NCp), jnp.float32),
        in_specs=[vmem] * 6,
        out_specs=vmem,
        scratch_shapes=[pltpu.VMEM((T * Bp, 4 * H), jnp.float32)],
        cost_estimate=pl.CostEstimate(flops=flops,
                                      transcendentals=transcendentals,
                                      bytes_accessed=bytes_accessed),
    )(xt, buffers["wconv"], buffers["wih"], buffers["whh_f"],
      buffers["fcw"], buffers["bias"])

    return out[:B, :NC]


# ----------------------------------------------------------------------------
# Pure-JAX reference (original un-fused structure, full bidirectional LSTM)
# ----------------------------------------------------------------------------
def _reference_forward(params, x_tokens):
    hp = jax.lax.Precision.HIGHEST
    emb = jnp.take(params["embedding"], x_tokens, axis=0)
    B, T, _ = emb.shape
    H = params["w_hh_f"].shape[0]

    cnn_outs = []
    for (w, b) in params["convs"]:
        k, _, F = w.shape
        t_out = T - k + 1
        acc = jnp.zeros((B, t_out, F), jnp.float32)
        for j in range(k):
            acc = acc + jnp.einsum("bte,ef->btf", emb[:, j:j + t_out, :], w[j],
                                   precision=hp)
        cnn_outs.append(jnp.max(jnp.maximum(acc + b, 0.0), axis=1))
    cnn_out = jnp.concatenate(cnn_outs, axis=1)

    def run_lstm(xs, wih, whh, bias):
        h = jnp.zeros((B, H), jnp.float32)
        c = jnp.zeros((B, H), jnp.float32)
        hs = []
        for t in range(xs.shape[1]):
            g = (jnp.dot(xs[:, t, :], wih, precision=hp)
                 + jnp.dot(h, whh, precision=hp) + bias)
            i = jax.nn.sigmoid(g[:, :H]); f = jax.nn.sigmoid(g[:, H:2 * H])
            gg = jnp.tanh(g[:, 2 * H:3 * H]); o = jax.nn.sigmoid(g[:, 3 * H:])
            c = f * c + i * gg
            h = o * jnp.tanh(c)
            hs.append(h)
        return jnp.stack(hs, axis=1)

    h_f = run_lstm(emb, params["w_ih_f"], params["w_hh_f"], params["b_f"])
    h_b = run_lstm(emb[:, ::-1, :], params["w_ih_b"], params["w_hh_b"],
                   params["b_b"])[:, ::-1, :]
    blstm_last = jnp.concatenate([h_f[:, -1, :], h_b[:, -1, :]], axis=1)

    combined = jnp.concatenate([cnn_out, blstm_last], axis=1)
    return jnp.dot(combined, params["fc_w"], precision=hp) + params["fc_b"]


# ----------------------------------------------------------------------------
if __name__ == "__main__":
    vocab_size, embed_dim, num_classes = 50, 16, 5
    hidden_dim, kernel_sizes, num_filters = 32, (3, 4, 5), 8
    B, T = 2, 16

    key = jax.random.PRNGKey(0)
    k_param, k_data = jax.random.split(key)
    params = init_params(k_param, vocab_size, embed_dim, num_classes,
                         hidden_dim, kernel_sizes, num_filters)
    x_tokens = jax.random.randint(k_data, (B, T), 0, vocab_size,
                                  dtype=jnp.int32)

    # One-time packing (off the per-call hot path), then jit the forward with
    # the static meta baked in.
    buffers, meta = prepare_params(params)
    fwd = jax.jit(functools.partial(parallel_cnn_blstm_forward, meta=meta))

    out = jax.block_until_ready(fwd(buffers, x_tokens))
    assert out.shape == (B, num_classes), out.shape
    assert out.dtype == jnp.float32

    # Correctness check against the un-fused full-bidirectional reference.
    ref = _reference_forward(params, x_tokens)
    err = float(jnp.max(jnp.abs(out - ref)))
    scale = float(jnp.max(jnp.abs(ref))) + 1e-6
    assert err <= 5e-3 * scale + 1e-3, (err, scale)

    print("KERNEL_OK")
</pallas_src>

<mosaic_0001>
module attributes {stable_mosaic.version = 11 : i64} {
  func.func @kernel(%arg0: memref<160x16xf32, #tpu.memory_space<vmem>>, %arg1: memref<80x128xf32, #tpu.memory_space<vmem>>, %arg2: memref<16x256xf32, #tpu.memory_space<vmem>>, %arg3: memref<32x128xf32, #tpu.memory_space<vmem>>, %arg4: memref<192x128xf32, #tpu.memory_space<vmem>>, %arg5: memref<4x128xf32, #tpu.memory_space<vmem>>, %arg6: memref<8x128xf32, #tpu.memory_space<vmem>>, %arg7: memref<128x128xf32, #tpu.memory_space<vmem>>) attributes {dimension_semantics = [], scalar_prefetch = 0 : i64, scratch_operands = 1 : i64, tpu.core_type = #tpu.core_type<tc>} {
    %c0 = arith.constant 0 : index
    %c0_0 = arith.constant 0 : index
    %0 = vector.load %arg0[%c0, %c0_0] : memref<160x16xf32, #tpu.memory_space<vmem>>, vector<128x16xf32>
    %c0_1 = arith.constant 0 : index
    %c0_2 = arith.constant 0 : index
    %1 = vector.load %arg1[%c0_1, %c0_2] : memref<80x128xf32, #tpu.memory_space<vmem>>, vector<16x128xf32>
    %cst = arith.constant dense<0.000000e+00> : vector<128x128xf32>
    %2 = tpu.matmul %0, %1, %cst {dimension_numbers = #tpu.dot_dimension_numbers<[1], [0], [0], [1], [0, 0, 1, 1], [], []>} : vector<128x16xf32>, vector<16x128xf32>, vector<128x128xf32> -> vector<128x128xf32>
    %c8 = arith.constant 8 : index
    %c0_3 = arith.constant 0 : index
    %3 = vector.load %arg0[%c8, %c0_3] : memref<160x16xf32, #tpu.memory_space<vmem>>, vector<128x16xf32>
    %c16 = arith.constant 16 : index
    %c0_4 = arith.constant 0 : index
    %4 = vector.load %arg1[%c16, %c0_4] : memref<80x128xf32, #tpu.memory_space<vmem>>, vector<16x128xf32>
    %cst_5 = arith.constant dense<0.000000e+00> : vector<128x128xf32>
    %5 = tpu.matmul %3, %4, %cst_5 {dimension_numbers = #tpu.dot_dimension_numbers<[1], [0], [0], [1], [0, 0, 1, 1], [], []>} : vector<128x16xf32>, vector<16x128xf32>, vector<128x128xf32> -> vector<128x128xf32>
    %6 = arith.addf %2, %5 : vector<128x128xf32>
    %c16_6 = arith.constant 16 : index
    %c0_7 = arith.constant 0 : index
    %7 = vector.load %arg0[%c16_6, %c0_7] : memref<160x16xf32, #tpu.memory_space<vmem>>, vector<128x16xf32>
    %c32 = arith.constant 32 : index
    %c0_8 = arith.constant 0 : index
    %8 = vector.load %arg1[%c32, %c0_8] : memref<80x128xf32, #tpu.memory_space<vmem>>, vector<16x128xf32>
    %cst_9 = arith.constant dense<0.000000e+00> : vector<128x128xf32>
    %9 = tpu.matmul %7, %8, %cst_9 {dimension_numbers = #tpu.dot_dimension_numbers<[1], [0], [0], [1], [0, 0, 1, 1], [], []>} : vector<128x16xf32>, vector<16x128xf32>, vector<128x128xf32> -> vector<128x128xf32>
    %10 = arith.addf %6, %9 : vector<128x128xf32>
    %c24 = arith.constant 24 : index
    %c0_10 = arith.constant 0 : index
    %11 = vector.load %arg0[%c24, %c0_10] : memref<160x16xf32, #tpu.memory_space<vmem>>, vector<128x16xf32>
    %c48 = arith.constant 48 : index
    %c0_11 = arith.constant 0 : index
    %12 = vector.load %arg1[%c48, %c0_11] : memref<80x128xf32, #tpu.memory_space<vmem>>, vector<16x128xf32>
    %cst_12 = arith.constant dense<0.000000e+00> : vector<128x128xf32>
    %13 = tpu.matmul %11, %12, %cst_12 {dimension_numbers = #tpu.dot_dimension_numbers<[1], [0], [0], [1], [0, 0, 1, 1], [], []>} : vector<128x16xf32>, vector<16x128xf32>, vector<128x128xf32> -> vector<128x128xf32>
    %14 = arith.addf %10, %13 : vector<128x128xf32>
    %c32_13 = arith.constant 32 : index
    %c0_14 = arith.constant 0 : index
    %15 = vector.load %arg0[%c32_13, %c0_14] : memref<160x16xf32, #tpu.memory_space<vmem>>, vector<128x16xf32>
    %c64 = arith.constant 64 : index
    %c0_15 = arith.constant 0 : index
    %16 = vector.load %arg1[%c64, %c0_15] : memref<80x128xf32, #tpu.memory_space<vmem>>, vector<16x128xf32>
    %cst_16 = arith.constant dense<0.000000e+00> : vector<128x128xf32>
    %17 = tpu.matmul %15, %16, %cst_16 {dimension_numbers = #tpu.dot_dimension_numbers<[1], [0], [0], [1], [0, 0, 1, 1], [], []>} : vector<128x16xf32>, vector<16x128xf32>, vector<128x128xf32> -> vector<128x128xf32>
    %18 = arith.addf %14, %17 : vector<128x128xf32>
    %c0_17 = arith.constant 0 : index
    %c0_18 = arith.constant 0 : index
    %19 = vector.load %arg5[%c0_17, %c0_18] : memref<4x128xf32, #tpu.memory_space<vmem>>, vector<1x128xf32>
    %20 = vector.broadcast %19 : vector<1x128xf32> to vector<128x128xf32>
    %21 = arith.addf %18, %20 : vector<128x128xf32>
    %cst_19 = arith.constant 0.000000e+00 : f32
    %22 = vector.broadcast %cst_19 : f32 to vector<128x128xf32>
    %23 = arith.maximumf %21, %22 : vector<128x128xf32>
    %24 = tpu.iota {dimensions = array<i32: 1>} : vector<8x128xi32>
    %25 = vector.extract_strided_slice %23 {offsets = [0, 0], sizes = [8, 128], strides = [1, 1]} : vector<128x128xf32> to vector<8x128xf32>
    %26 = vector.extract_strided_slice %23 {offsets = [8, 0], sizes = [8, 128], strides = [1, 1]} : vector<128x128xf32> to vector<8x128xf32>
    %27 = arith.maximumf %25, %26 : vector<8x128xf32>
    %28 = vector.extract_strided_slice %23 {offsets = [16, 0], sizes = [8, 128], strides = [1, 1]} : vector<128x128xf32> to vector<8x128xf32>
    %29 = arith.maximumf %27, %28 : vector<8x128xf32>
    %30 = vector.extract_strided_slice %23 {offsets = [24, 0], sizes = [8, 128], strides = [1, 1]} : vector<128x128xf32> to vector<8x128xf32>
    %31 = arith.maximumf %29, %30 : vector<8x128xf32>
    %32 = vector.extract_strided_slice %23 {offsets = [32, 0], sizes = [8, 128], strides = [1, 1]} : vector<128x128xf32> to vector<8x128xf32>
    %33 = arith.maximumf %31, %32 : vector<8x128xf32>
    %34 = vector.extract_strided_slice %23 {offsets = [40, 0], sizes = [8, 128], strides = [1, 1]} : vector<128x128xf32> to vector<8x128xf32>
    %35 = arith.maximumf %33, %34 : vector<8x128xf32>
    %36 = vector.extract_strided_slice %23 {offsets = [48, 0], sizes = [8, 128], strides = [1, 1]} : vector<128x128xf32> to vector<8x128xf32>
    %37 = arith.maximumf %35, %36 : vector<8x128xf32>
    %38 = vector.extract_strided_slice %23 {offsets = [56, 0], sizes = [8, 128], strides = [1, 1]} : vector<128x128xf32> to vector<8x128xf32>
    %39 = arith.maximumf %37, %38 : vector<8x128xf32>
    %40 = vector.extract_strided_slice %23 {offsets = [64, 0], sizes = [8, 128], strides = [1, 1]} : vector<128x128xf32> to vector<8x128xf32>
    %41 = arith.maximumf %39, %40 : vector<8x128xf32>
    %42 = vector.extract_strided_slice %23 {offsets = [72, 0], sizes = [8, 128], strides = [1, 1]} : vector<128x128xf32> to vector<8x128xf32>
    %43 = arith.maximumf %41, %42 : vector<8x128xf32>
    %44 = vector.extract_strided_slice %23 {offsets = [80, 0], sizes = [8, 128], strides = [1, 1]} : vector<128x128xf32> to vector<8x128xf32>
    %45 = arith.maximumf %43, %44 : vector<8x128xf32>
    %46 = vector.extract_strided_slice %23 {offsets = [88, 0], sizes = [8, 128], strides = [1, 1]} : vector<128x128xf32> to vector<8x128xf32>
    %47 = arith.maximumf %45, %46 : vector<8x128xf32>
    %48 = vector.extract_strided_slice %23 {offsets = [96, 0], sizes = [8, 128], strides = [1, 1]} : vector<128x128xf32> to vector<8x128xf32>
    %c0_i32 = arith.constant 0 : i32
    %49 = vector.broadcast %c0_i32 : i32 to vector<8x128xi32>
    %50 = arith.cmpi sge, %24, %49 : vector<8x128xi32>
    %c8_i32 = arith.constant 8 : i32
    %51 = vector.broadcast %c8_i32 : i32 to vector<8x128xi32>
    %52 = arith.cmpi slt, %24, %51 : vector<8x128xi32>
    %53 = arith.andi %50, %52 : vector<8x128xi1>
    %c8_i32_20 = arith.constant 8 : i32
    %54 = vector.broadcast %c8_i32_20 : i32 to vector<8x128xi32>
    %55 = arith.cmpi sge, %24, %54 : vector<8x128xi32>
    %c16_i32 = arith.constant 16 : i32
    %56 = vector.broadcast %c16_i32 : i32 to vector<8x128xi32>
    %57 = arith.cmpi slt, %24, %56 : vector<8x128xi32>
    %58 = arith.andi %55, %57 : vector<8x128xi1>
    %59 = arith.ori %53, %58 : vector<8x128xi1>
    %cst_21 = arith.constant 0.000000e+00 : f32
    %60 = vector.broadcast %cst_21 : f32 to vector<8x128xf32>
    %61 = arith.select %59, %48, %60 : vector<8x128xi1>, vector<8x128xf32>
    %62 = arith.maximumf %47, %61 : vector<8x128xf32>
    %63 = vector.extract_strided_slice %23 {offsets = [104, 0], sizes = [8, 128], strides = [1, 1]} : vector<128x128xf32> to vector<8x128xf32>
    %c0_i32_22 = arith.constant 0 : i32
    %64 = vector.broadcast %c0_i32_22 : i32 to vector<8x128xi32>
    %65 = arith.cmpi sge, %24, %64 : vector<8x128xi32>
    %c8_i32_23 = arith.constant 8 : i32
    %66 = vector.broadcast %c8_i32_23 : i32 to vector<8x128xi32>
    %67 = arith.cmpi slt, %24, %66 : vector<8x128xi32>
    %68 = arith.andi %65, %67 : vector<8x128xi1>
    %cst_24 = arith.constant 0.000000e+00 : f32
    %69 = vector.broadcast %cst_24 : f32 to vector<8x128xf32>
    %70 = arith.select %68, %63, %69 : vector<8x128xi1>, vector<8x128xf32>
    %71 = arith.maximumf %62, %70 : vector<8x128xf32>
    %c0_25 = arith.constant 0 : index
    %c0_26 = arith.constant 0 : index
    %72 = vector.load %arg0[%c0_25, %c0_26] : memref<160x16xf32, #tpu.memory_space<vmem>>, vector<128x16xf32>
    %c0_27 = arith.constant 0 : index
    %c0_28 = arith.constant 0 : index
    %73 = vector.load %arg2[%c0_27, %c0_28] : memref<16x256xf32, #tpu.memory_space<vmem>>, vector<16x128xf32>
    %cst_29 = arith.constant dense<0.000000e+00> : vector<128x128xf32>
    %74 = tpu.matmul %72, %73, %cst_29 {dimension_numbers = #tpu.dot_dimension_numbers<[1], [0], [0], [1], [0, 0, 1, 1], [], []>} : vector<128x16xf32>, vector<16x128xf32>, vector<128x128xf32> -> vector<128x128xf32>
    %c1 = arith.constant 1 : index
    %c0_30 = arith.constant 0 : index
    %75 = vector.load %arg5[%c1, %c0_30] : memref<4x128xf32, #tpu.memory_space<vmem>>, vector<1x128xf32>
    %76 = vector.broadcast %75 : vector<1x128xf32> to vector<128x128xf32>
    %77 = arith.addf %74, %76 : vector<128x128xf32>
    %c0_31 = arith.constant 0 : index
    %c0_32 = arith.constant 0 : index
    %78 = vector.load %arg7[%c0_31, %c0_32] : memref<128x128xf32, #tpu.memory_space<vmem>>, vector<128x128xf32>
    tpu.vector_store %arg7[%c0_31, %c0_32], %77 {strides = array<i32>} : memref<128x128xf32, #tpu.memory_space<vmem>>, vector<128x128xf32>,
    %c0_33 = arith.constant 0 : index
    %c0_34 = arith.constant 0 : index
    %79 = vector.load %arg3[%c0_33, %c0_34] : memref<32x128xf32, #tpu.memory_space<vmem>>, vector<32x128xf32>
    %cst_35 = arith.constant 0.000000e+00 : f32
    %80 = vector.broadcast %cst_35 : f32 to vector<8x32xf32>
    %cst_36 = arith.constant 0.000000e+00 : f32
    %81 = vector.broadcast %cst_36 : f32 to vector<8x32xf32>
    %c0_37 = arith.constant 0 : index
    %c0_38 = arith.constant 0 : index
    %82 = vector.load %arg7[%c0_37, %c0_38] : memref<128x128xf32, #tpu.memory_space<vmem>>, vector<8x128xf32>
    %cst_39 = arith.constant dense<0.000000e+00> : vector<8x128xf32>
    %83 = tpu.matmul %80, %79, %cst_39 {dimension_numbers = #tpu.dot_dimension_numbers<[1], [0], [0], [1], [0, 0, 1, 1], [], []>} : vector<8x32xf32>, vector<32x128xf32>, vector<8x128xf32> -> vector<8x128xf32>
    %84 = arith.addf %82, %83 : vector<8x128xf32>
    %85 = vector.extract_strided_slice %84 {offsets = [0, 0], sizes = [8, 32], strides = [1, 1]} : vector<8x128xf32> to vector<8x32xf32>
    %86 = arith.negf %85 : vector<8x32xf32>
    %87 = math.exp %86 : vector<8x32xf32>
    %cst_40 = arith.constant 1.000000e+00 : f32
    %88 = vector.broadcast %cst_40 : f32 to vector<8x32xf32>
    %89 = arith.addf %88, %87 : vector<8x32xf32>
    %90 = arith.divf %88, %89 : vector<8x32xf32>
    %91 = vector.extract_strided_slice %84 {offsets = [0, 32], sizes = [8, 32], strides = [1, 1]} : vector<8x128xf32> to vector<8x32xf32>
    %92 = arith.negf %91 : vector<8x32xf32>
    %93 = math.exp %92 : vector<8x32xf32>
    %cst_41 = arith.constant 1.000000e+00 : f32
    %94 = vector.broadcast %cst_41 : f32 to vector<8x32xf32>
    %95 = arith.addf %94, %93 : vector<8x32xf32>
    %96 = arith.divf %94, %95 : vector<8x32xf32>
    %97 = vector.extract_strided_slice %84 {offsets = [0, 64], sizes = [8, 32], strides = [1, 1]} : vector<8x128xf32> to vector<8x32xf32>
    %98 = math.tanh %97 : vector<8x32xf32>
    %99 = vector.extract_strided_slice %84 {offsets = [0, 96], sizes = [8, 32], strides = [1, 1]} : vector<8x128xf32> to vector<8x32xf32>
    %100 = arith.negf %99 : vector<8x32xf32>
    %101 = math.exp %100 : vector<8x32xf32>
    %cst_42 = arith.constant 1.000000e+00 : f32
    %102 = vector.broadcast %cst_42 : f32 to vector<8x32xf32>
    %103 = arith.addf %102, %101 : vector<8x32xf32>
    %104 = arith.divf %102, %103 : vector<8x32xf32>
    %105 = arith.mulf %96, %81 : vector<8x32xf32>
    %106 = arith.mulf %90, %98 : vector<8x32xf32>
    %107 = arith.addf %105, %106 : vector<8x32xf32>
    %108 = math.tanh %107 : vector<8x32xf32>
    %109 = arith.mulf %104, %108 : vector<8x32xf32>
    %c8_43 = arith.constant 8 : index
    %c0_44 = arith.constant 0 : index
    %110 = vector.load %arg7[%c8_43, %c0_44] : memref<128x128xf32, #tpu.memory_space<vmem>>, vector<8x128xf32>
    %cst_45 = arith.constant dense<0.000000e+00> : vector<8x128xf32>
    %111 = tpu.matmul %109, %79, %cst_45 {dimension_numbers = #tpu.dot_dimension_numbers<[1], [0], [0], [1], [0, 0, 1, 1], [], []>} : vector<8x32xf32>, vector<32x128xf32>, vector<8x128xf32> -> vector<8x128xf32>
    %112 = arith.addf %110, %111 : vector<8x128xf32>
    %113 = vector.extract_strided_slice %112 {offsets = [0, 0], sizes = [8, 32], strides = [1, 1]} : vector<8x128xf32> to vector<8x32xf32>
    %114 = arith.negf %113 : vector<8x32xf32>
    %115 = math.exp %114 : vector<8x32xf32>
    %cst_46 = arith.constant 1.000000e+00 : f32
    %116 = vector.broadcast %cst_46 : f32 to vector<8x32xf32>
    %117 = arith.addf %116, %115 : vector<8x32xf32>
    %118 = arith.divf %116, %117 : vector<8x32xf32>
    %119 = vector.extract_strided_slice %112 {offsets = [0, 32], sizes = [8, 32], strides = [1, 1]} : vector<8x128xf32> to vector<8x32xf32>
    %120 = arith.negf %119 : vector<8x32xf32>
    %121 = math.exp %120 : vector<8x32xf32>
    %cst_47 = arith.constant 1.000000e+00 : f32
    %122 = vector.broadcast %cst_47 : f32 to vector<8x32xf32>
    %123 = arith.addf %122, %121 : vector<8x32xf32>
    %124 = arith.divf %122, %123 : vector<8x32xf32>
    %125 = vector.extract_strided_slice %112 {offsets = [0, 64], sizes = [8, 32], strides = [1, 1]} : vector<8x128xf32> to vector<8x32xf32>
    %126 = math.tanh %125 : vector<8x32xf32>
    %127 = vector.extract_strided_slice %112 {offsets = [0, 96], sizes = [8, 32], strides = [1, 1]} : vector<8x128xf32> to vector<8x32xf32>
    %128 = arith.negf %127 : vector<8x32xf32>
    %129 = math.exp %128 : vector<8x32xf32>
    %cst_48 = arith.constant 1.000000e+00 : f32
    %130 = vector.broadcast %cst_48 : f32 to vector<8x32xf32>
    %131 = arith.addf %130, %129 : vector<8x32xf32>
    %132 = arith.divf %130, %131 : vector<8x32xf32>
    %133 = arith.mulf %124, %107 : vector<8x32xf32>
    %134 = arith.mulf %118, %126 : vector<8x32xf32>
    %135 = arith.addf %133, %134 : vector<8x32xf32>
    %136 = math.tanh %135 : vector<8x32xf32>
    %137 = arith.mulf %132, %136 : vector<8x32xf32>
    %c16_49 = arith.constant 16 : index
    %c0_50 = arith.constant 0 : index
    %138 = vector.load %arg7[%c16_49, %c0_50] : memref<128x128xf32, #tpu.memory_space<vmem>>, vector<8x128xf32>
    %cst_51 = arith.constant dense<0.000000e+00> : vector<8x128xf32>
    %139 = tpu.matmul %137, %79, %cst_51 {dimension_numbers = #tpu.dot_dimension_numbers<[1], [0], [0], [1], [0, 0, 1, 1], [], []>} : vector<8x32xf32>, vector<32x128xf32>, vector<8x128xf32> -> vector<8x128xf32>
    %140 = arith.addf %138, %139 : vector<8x128xf32>
    %141 = vector.extract_strided_slice %140 {offsets = [0, 0], sizes = [8, 32], strides = [1, 1]} : vector<8x128xf32> to vector<8x32xf32>
    %142 = arith.negf %141 : vector<8x32xf32>
    %143 = math.exp %142 : vector<8x32xf32>
    %cst_52 = arith.constant 1.000000e+00 : f32
    %144 = vector.broadcast %cst_52 : f32 to vector<8x32xf32>
    %145 = arith.addf %144, %143 : vector<8x32xf32>
    %146 = arith.divf %144, %145 : vector<8x32xf32>
    %147 = vector.extract_strided_slice %140 {offsets = [0, 32], sizes = [8, 32], strides = [1, 1]} : vector<8x128xf32> to vector<8x32xf32>
    %148 = arith.negf %147 : vector<8x32xf32>
    %149 = math.exp %148 : vector<8x32xf32>
    %cst_53 = arith.constant 1.000000e+00 : f32
    %150 = vector.broadcast %cst_53 : f32 to vector<8x32xf32>
    %151 = arith.addf %150, %149 : vector<8x32xf32>
    %152 = arith.divf %150, %151 : vector<8x32xf32>
    %153 = vector.extract_strided_slice %140 {offsets = [0, 64], sizes = [8, 32], strides = [1, 1]} : vector<8x128xf32> to vector<8x32xf32>
    %154 = math.tanh %153 : vector<8x32xf32>
    %155 = vector.extract_strided_slice %140 {offsets = [0, 96], sizes = [8, 32], strides = [1, 1]} : vector<8x128xf32> to vector<8x32xf32>
    %156 = arith.negf %155 : vector<8x32xf32>
    %157 = math.exp %156 : vector<8x32xf32>
    %cst_54 = arith.constant 1.000000e+00 : f32
    %158 = vector.broadcast %cst_54 : f32 to vector<8x32xf32>
    %159 = arith.addf %158, %157 : vector<8x32xf32>
    %160 = arith.divf %158, %159 : vector<8x32xf32>
    %161 = arith.mulf %152, %135 : vector<8x32xf32>
    %162 = arith.mulf %146, %154 : vector<8x32xf32>
    %163 = arith.addf %161, %162 : vector<8x32xf32>
    %164 = math.tanh %163 : vector<8x32xf32>
    %165 = arith.mulf %160, %164 : vector<8x32xf32>
    %c24_55 = arith.constant 24 : index
    %c0_56 = arith.constant 0 : index
    %166 = vector.load %arg7[%c24_55, %c0_56] : memref<128x128xf32, #tpu.memory_space<vmem>>, vector<8x128xf32>
    %cst_57 = arith.constant dense<0.000000e+00> : vector<8x128xf32>
    %167 = tpu.matmul %165, %79, %cst_57 {dimension_numbers = #tpu.dot_dimension_numbers<[1], [0], [0], [1], [0, 0, 1, 1], [], []>} : vector<8x32xf32>, vector<32x128xf32>, vector<8x128xf32> -> vector<8x128xf32>
    %168 = arith.addf %166, %167 : vector<8x128xf32>
    %169 = vector.extract_strided_slice %168 {offsets = [0, 0], sizes = [8, 32], strides = [1, 1]} : vector<8x128xf32> to vector<8x32xf32>
    %170 = arith.negf %169 : vector<8x32xf32>
    %171 = math.exp %170 : vector<8x32xf32>
    %cst_58 = arith.constant 1.000000e+00 : f32
    %172 = vector.broadcast %cst_58 : f32 to vector<8x32xf32>
    %173 = arith.addf %172, %171 : vector<8x32xf32>
    %174 = arith.divf %172, %173 : vector<8x32xf32>
    %175 = vector.extract_strided_slice %168 {offsets = [0, 32], sizes = [8, 32], strides = [1, 1]} : vector<8x128xf32> to vector<8x32xf32>
    %176 = arith.negf %175 : vector<8x32xf32>
    %177 = math.exp %176 : vector<8x32xf32>
    %cst_59 = arith.constant 1.000000e+00 : f32
    %178 = vector.broadcast %cst_59 : f32 to vector<8x32xf32>
    %179 = arith.addf %178, %177 : vector<8x32xf32>
    %180 = arith.divf %178, %179 : vector<8x32xf32>
    %181 = vector.extract_strided_slice %168 {offsets = [0, 64], sizes = [8, 32], strides = [1, 1]} : vector<8x128xf32> to vector<8x32xf32>
    %182 = math.tanh %181 : vector<8x32xf32>
    %183 = vector.extract_strided_slice %168 {offsets = [0, 96], sizes = [8, 32], strides = [1, 1]} : vector<8x128xf32> to vector<8x32xf32>
    %184 = arith.negf %183 : vector<8x32xf32>
    %185 = math.exp %184 : vector<8x32xf32>
    %cst_60 = arith.constant 1.000000e+00 : f32
    %186 = vector.broadcast %cst_60 : f32 to vector<8x32xf32>
    %187 = arith.addf %186, %185 : vector<8x32xf32>
    %188 = arith.divf %186, %187 : vector<8x32xf32>
    %189 = arith.mulf %180, %163 : vector<8x32xf32>
    %190 = arith.mulf %174, %182 : vector<8x32xf32>
    %191 = arith.addf %189, %190 : vector<8x32xf32>
    %192 = math.tanh %191 : vector<8x32xf32>
    %193 = arith.mulf %188, %192 : vector<8x32xf32>
    %c32_61 = arith.constant 32 : index
    %c0_62 = arith.constant 0 : index
    %194 = vector.load %arg7[%c32_61, %c0_62] : memref<128x128xf32, #tpu.memory_space<vmem>>, vector<8x128xf32>
    %cst_63 = arith.constant dense<0.000000e+00> : vector<8x128xf32>
    %195 = tpu.matmul %193, %79, %cst_63 {dimension_numbers = #tpu.dot_dimension_numbers<[1], [0], [0], [1], [0, 0, 1, 1], [], []>} : vector<8x32xf32>, vector<32x128xf32>, vector<8x128xf32> -> vector<8x128xf32>
    %196 = arith.addf %194, %195 : vector<8x128xf32>
    %197 = vector.extract_strided_slice %196 {offsets = [0, 0], sizes = [8, 32], strides = [1, 1]} : vector<8x128xf32> to vector<8x32xf32>
    %198 = arith.negf %197 : vector<8x32xf32>
    %199 = math.exp %198 : vector<8x32xf32>
    %cst_64 = arith.constant 1.000000e+00 : f32
    %200 = vector.broadcast %cst_64 : f32 to vector<8x32xf32>
    %201 = arith.addf %200, %199 : vector<8x32xf32>
    %202 = arith.divf %200, %201 : vector<8x32xf32>
    %203 = vector.extract_strided_slice %196 {offsets = [0, 32], sizes = [8, 32], strides = [1, 1]} : vector<8x128xf32> to vector<8x32xf32>
    %204 = arith.negf %203 : vector<8x32xf32>
    %205 = math.exp %204 : vector<8x32xf32>
    %cst_65 = arith.constant 1.000000e+00 : f32
    %206 = vector.broadcast %cst_65 : f32 to vector<8x32xf32>
    %207 = arith.addf %206, %205 : vector<8x32xf32>
    %208 = arith.divf %206, %207 : vector<8x32xf32>
    %209 = vector.extract_strided_slice %196 {offsets = [0, 64], sizes = [8, 32], strides = [1, 1]} : vector<8x128xf32> to vector<8x32xf32>
    %210 = math.tanh %209 : vector<8x32xf32>
    %211 = vector.extract_strided_slice %196 {offsets = [0, 96], sizes = [8, 32], strides = [1, 1]} : vector<8x128xf32> to vector<8x32xf32>
    %212 = arith.negf %211 : vector<8x32xf32>
    %213 = math.exp %212 : vector<8x32xf32>
    %cst_66 = arith.constant 1.000000e+00 : f32
    %214 = vector.broadcast %cst_66 : f32 to vector<8x32xf32>
    %215 = arith.addf %214, %213 : vector<8x32xf32>
    %216 = arith.divf %214, %215 : vector<8x32xf32>
    %217 = arith.mulf %208, %191 : vector<8x32xf32>
    %218 = arith.mulf %202, %210 : vector<8x32xf32>
    %219 = arith.addf %217, %218 : vector<8x32xf32>
    %220 = math.tanh %219 : vector<8x32xf32>
    %221 = arith.mulf %216, %220 : vector<8x32xf32>
    %c40 = arith.constant 40 : index
    %c0_67 = arith.constant 0 : index
    %222 = vector.load %arg7[%c40, %c0_67] : memref<128x128xf32, #tpu.memory_space<vmem>>, vector<8x128xf32>
    %cst_68 = arith.constant dense<0.000000e+00> : vector<8x128xf32>
    %223 = tpu.matmul %221, %79, %cst_68 {dimension_numbers = #tpu.dot_dimension_numbers<[1], [0], [0], [1], [0, 0, 1, 1], [], []>} : vector<8x32xf32>, vector<32x128xf32>, vector<8x128xf32> -> vector<8x128xf32>
    %224 = arith.addf %222, %223 : vector<8x128xf32>
    %225 = vector.extract_strided_slice %224 {offsets = [0, 0], sizes = [8, 32], strides = [1, 1]} : vector<8x128xf32> to vector<8x32xf32>
    %226 = arith.negf %225 : vector<8x32xf32>
    %227 = math.exp %226 : vector<8x32xf32>
    %cst_69 = arith.constant 1.000000e+00 : f32
    %228 = vector.broadcast %cst_69 : f32 to vector<8x32xf32>
    %229 = arith.addf %228, %227 : vector<8x32xf32>
    %230 = arith.divf %228, %229 : vector<8x32xf32>
    %231 = vector.extract_strided_slice %224 {offsets = [0, 32], sizes = [8, 32], strides = [1, 1]} : vector<8x128xf32> to vector<8x32xf32>
    %232 = arith.negf %231 : vector<8x32xf32>
    %233 = math.exp %232 : vector<8x32xf32>
    %cst_70 = arith.constant 1.000000e+00 : f32
    %234 = vector.broadcast %cst_70 : f32 to vector<8x32xf32>
    %235 = arith.addf %234, %233 : vector<8x32xf32>
    %236 = arith.divf %234, %235 : vector<8x32xf32>
    %237 = vector.extract_strided_slice %224 {offsets = [0, 64], sizes = [8, 32], strides = [1, 1]} : vector<8x128xf32> to vector<8x32xf32>
    %238 = math.tanh %237 : vector<8x32xf32>
    %239 = vector.extract_strided_slice %224 {offsets = [0, 96], sizes = [8, 32], strides = [1, 1]} : vector<8x128xf32> to vector<8x32xf32>
    %240 = arith.negf %239 : vector<8x32xf32>
    %241 = math.exp %240 : vector<8x32xf32>
    %cst_71 = arith.constant 1.000000e+00 : f32
    %242 = vector.broadcast %cst_71 : f32 to vector<8x32xf32>
    %243 = arith.addf %242, %241 : vector<8x32xf32>
    %244 = arith.divf %242, %243 : vector<8x32xf32>
    %245 = arith.mulf %236, %219 : vector<8x32xf32>
    %246 = arith.mulf %230, %238 : vector<8x32xf32>
    %247 = arith.addf %245, %246 : vector<8x32xf32>
    %248 = math.tanh %247 : vector<8x32xf32>
    %249 = arith.mulf %244, %248 : vector<8x32xf32>
    %c48_72 = arith.constant 48 : index
    %c0_73 = arith.constant 0 : index
    %250 = vector.load %arg7[%c48_72, %c0_73] : memref<128x128xf32, #tpu.memory_space<vmem>>, vector<8x128xf32>
    %cst_74 = arith.constant dense<0.000000e+00> : vector<8x128xf32>
    %251 = tpu.matmul %249, %79, %cst_74 {dimension_numbers = #tpu.dot_dimension_numbers<[1], [0], [0], [1], [0, 0, 1, 1], [], []>} : vector<8x32xf32>, vector<32x128xf32>, vector<8x128xf32> -> vector<8x128xf32>
    %252 = arith.addf %250, %251 : vector<8x128xf32>
    %253 = vector.extract_strided_slice %252 {offsets = [0, 0], sizes = [8, 32], strides = [1, 1]} : vector<8x128xf32> to vector<8x32xf32>
    %254 = arith.negf %253 : vector<8x32xf32>
    %255 = math.exp %254 : vector<8x32xf32>
    %cst_75 = arith.constant 1.000000e+00 : f32
    %256 = vector.broadcast %cst_75 : f32 to vector<8x32xf32>
    %257 = arith.addf %256, %255 : vector<8x32xf32>
    %258 = arith.divf %256, %257 : vector<8x32xf32>
    %259 = vector.extract_strided_slice %252 {offsets = [0, 32], sizes = [8, 32], strides = [1, 1]} : vector<8x128xf32> to vector<8x32xf32>
    %260 = arith.negf %259 : vector<8x32xf32>
    %261 = math.exp %260 : vector<8x32xf32>
    %cst_76 = arith.constant 1.000000e+00 : f32
    %262 = vector.broadcast %cst_76 : f32 to vector<8x32xf32>
    %263 = arith.addf %262, %261 : vector<8x32xf32>
    %264 = arith.divf %262, %263 : vector<8x32xf32>
    %265 = vector.extract_strided_slice %252 {offsets = [0, 64], sizes = [8, 32], strides = [1, 1]} : vector<8x128xf32> to vector<8x32xf32>
    %266 = math.tanh %265 : vector<8x32xf32>
    %267 = vector.extract_strided_slice %252 {offsets = [0, 96], sizes = [8, 32], strides = [1, 1]} : vector<8x128xf32> to vector<8x32xf32>
    %268 = arith.negf %267 : vector<8x32xf32>
    %269 = math.exp %268 : vector<8x32xf32>
    %cst_77 = arith.constant 1.000000e+00 : f32
    %270 = vector.broadcast %cst_77 : f32 to vector<8x32xf32>
    %271 = arith.addf %270, %269 : vector<8x32xf32>
    %272 = arith.divf %270, %271 : vector<8x32xf32>
    %273 = arith.mulf %264, %247 : vector<8x32xf32>
    %274 = arith.mulf %258, %266 : vector<8x32xf32>
    %275 = arith.addf %273, %274 : vector<8x32xf32>
    %276 = math.tanh %275 : vector<8x32xf32>
    %277 = arith.mulf %272, %276 : vector<8x32xf32>
    %c56 = arith.constant 56 : index
    %c0_78 = arith.constant 0 : index
    %278 = vector.load %arg7[%c56, %c0_78] : memref<128x128xf32, #tpu.memory_space<vmem>>, vector<8x128xf32>
    %cst_79 = arith.constant dense<0.000000e+00> : vector<8x128xf32>
    %279 = tpu.matmul %277, %79, %cst_79 {dimension_numbers = #tpu.dot_dimension_numbers<[1], [0], [0], [1], [0, 0, 1, 1], [], []>} : vector<8x32xf32>, vector<32x128xf32>, vector<8x128xf32> -> vector<8x128xf32>
    %280 = arith.addf %278, %279 : vector<8x128xf32>
    %281 = vector.extract_strided_slice %280 {offsets = [0, 0], sizes = [8, 32], strides = [1, 1]} : vector<8x128xf32> to vector<8x32xf32>
    %282 = arith.negf %281 : vector<8x32xf32>
    %283 = math.exp %282 : vector<8x32xf32>
    %cst_80 = arith.constant 1.000000e+00 : f32
    %284 = vector.broadcast %cst_80 : f32 to vector<8x32xf32>
    %285 = arith.addf %284, %283 : vector<8x32xf32>
    %286 = arith.divf %284, %285 : vector<8x32xf32>
    %287 = vector.extract_strided_slice %280 {offsets = [0, 32], sizes = [8, 32], strides = [1, 1]} : vector<8x128xf32> to vector<8x32xf32>
    %288 = arith.negf %287 : vector<8x32xf32>
    %289 = math.exp %288 : vector<8x32xf32>
    %cst_81 = arith.constant 1.000000e+00 : f32
    %290 = vector.broadcast %cst_81 : f32 to vector<8x32xf32>
    %291 = arith.addf %290, %289 : vector<8x32xf32>
    %292 = arith.divf %290, %291 : vector<8x32xf32>
    %293 = vector.extract_strided_slice %280 {offsets = [0, 64], sizes = [8, 32], strides = [1, 1]} : vector<8x128xf32> to vector<8x32xf32>
    %294 = math.tanh %293 : vector<8x32xf32>
    %295 = vector.extract_strided_slice %280 {offsets = [0, 96], sizes = [8, 32], strides = [1, 1]} : vector<8x128xf32> to vector<8x32xf32>
    %296 = arith.negf %295 : vector<8x32xf32>
    %297 = math.exp %296 : vector<8x32xf32>
    %cst_82 = arith.constant 1.000000e+00 : f32
    %298 = vector.broadcast %cst_82 : f32 to vector<8x32xf32>
    %299 = arith.addf %298, %297 : vector<8x32xf32>
    %300 = arith.divf %298, %299 : vector<8x32xf32>
    %301 = arith.mulf %292, %275 : vector<8x32xf32>
    %302 = arith.mulf %286, %294 : vector<8x32xf32>
    %303 = arith.addf %301, %302 : vector<8x32xf32>
    %304 = math.tanh %303 : vector<8x32xf32>
    %305 = arith.mulf %300, %304 : vector<8x32xf32>
    %c64_83 = arith.constant 64 : index
    %c0_84 = arith.constant 0 : index
    %306 = vector.load %arg7[%c64_83, %c0_84] : memref<128x128xf32, #tpu.memory_space<vmem>>, vector<8x128xf32>
    %cst_85 = arith.constant dense<0.000000e+00> : vector<8x128xf32>
    %307 = tpu.matmul %305, %79, %cst_85 {dimension_numbers = #tpu.dot_dimension_numbers<[1], [0], [0], [1], [0, 0, 1, 1], [], []>} : vector<8x32xf32>, vector<32x128xf32>, vector<8x128xf32> -> vector<8x128xf32>
    %308 = arith.addf %306, %307 : vector<8x128xf32>
    %309 = vector.extract_strided_slice %308 {offsets = [0, 0], sizes = [8, 32], strides = [1, 1]} : vector<8x128xf32> to vector<8x32xf32>
    %310 = arith.negf %309 : vector<8x32xf32>
    %311 = math.exp %310 : vector<8x32xf32>
    %cst_86 = arith.constant 1.000000e+00 : f32
    %312 = vector.broadcast %cst_86 : f32 to vector<8x32xf32>
    %313 = arith.addf %312, %311 : vector<8x32xf32>
    %314 = arith.divf %312, %313 : vector<8x32xf32>
    %315 = vector.extract_strided_slice %308 {offsets = [0, 32], sizes = [8, 32], strides = [1, 1]} : vector<8x128xf32> to vector<8x32xf32>
    %316 = arith.negf %315 : vector<8x32xf32>
    %317 = math.exp %316 : vector<8x32xf32>
    %cst_87 = arith.constant 1.000000e+00 : f32
    %318 = vector.broadcast %cst_87 : f32 to vector<8x32xf32>
    %319 = arith.addf %318, %317 : vector<8x32xf32>
    %320 = arith.divf %318, %319 : vector<8x32xf32>
    %321 = vector.extract_strided_slice %308 {offsets = [0, 64], sizes = [8, 32], strides = [1, 1]} : vector<8x128xf32> to vector<8x32xf32>
    %322 = math.tanh %321 : vector<8x32xf32>
    %323 = vector.extract_strided_slice %308 {offsets = [0, 96], sizes = [8, 32], strides = [1, 1]} : vector<8x128xf32> to vector<8x32xf32>
    %324 = arith.negf %323 : vector<8x32xf32>
    %325 = math.exp %324 : vector<8x32xf32>
    %cst_88 = arith.constant 1.000000e+00 : f32
    %326 = vector.broadcast %cst_88 : f32 to vector<8x32xf32>
    %327 = arith.addf %326, %325 : vector<8x32xf32>
    %328 = arith.divf %326, %327 : vector<8x32xf32>
    %329 = arith.mulf %320, %303 : vector<8x32xf32>
    %330 = arith.mulf %314, %322 : vector<8x32xf32>
    %331 = arith.addf %329, %330 : vector<8x32xf32>
    %332 = math.tanh %331 : vector<8x32xf32>
    %333 = arith.mulf %328, %332 : vector<8x32xf32>
    %c72 = arith.constant 72 : index
    %c0_89 = arith.constant 0 : index
    %334 = vector.load %arg7[%c72, %c0_89] : memref<128x128xf32, #tpu.memory_space<vmem>>, vector<8x128xf32>
    %cst_90 = arith.constant dense<0.000000e+00> : vector<8x128xf32>
    %335 = tpu.matmul %333, %79, %cst_90 {dimension_numbers = #tpu.dot_dimension_numbers<[1], [0], [0], [1], [0, 0, 1, 1], [], []>} : vector<8x32xf32>, vector<32x128xf32>, vector<8x128xf32> -> vector<8x128xf32>
    %336 = arith.addf %334, %335 : vector<8x128xf32>
    %337 = vector.extract_strided_slice %336 {offsets = [0, 0], sizes = [8, 32], strides = [1, 1]} : vector<8x128xf32> to vector<8x32xf32>
    %338 = arith.negf %337 : vector<8x32xf32>
    %339 = math.exp %338 : vector<8x32xf32>
    %cst_91 = arith.constant 1.000000e+00 : f32
    %340 = vector.broadcast %cst_91 : f32 to vector<8x32xf32>
    %341 = arith.addf %340, %339 : vector<8x32xf32>
    %342 = arith.divf %340, %341 : vector<8x32xf32>
    %343 = vector.extract_strided_slice %336 {offsets = [0, 32], sizes = [8, 32], strides = [1, 1]} : vector<8x128xf32> to vector<8x32xf32>
    %344 = arith.negf %343 : vector<8x32xf32>
    %345 = math.exp %344 : vector<8x32xf32>
    %cst_92 = arith.constant 1.000000e+00 : f32
    %346 = vector.broadcast %cst_92 : f32 to vector<8x32xf32>
    %347 = arith.addf %346, %345 : vector<8x32xf32>
    %348 = arith.divf %346, %347 : vector<8x32xf32>
    %349 = vector.extract_strided_slice %336 {offsets = [0, 64], sizes = [8, 32], strides = [1, 1]} : vector<8x128xf32> to vector<8x32xf32>
    %350 = math.tanh %349 : vector<8x32xf32>
    %351 = vector.extract_strided_slice %336 {offsets = [0, 96], sizes = [8, 32], strides = [1, 1]} : vector<8x128xf32> to vector<8x32xf32>
    %352 = arith.negf %351 : vector<8x32xf32>
    %353 = math.exp %352 : vector<8x32xf32>
    %cst_93 = arith.constant 1.000000e+00 : f32
    %354 = vector.broadcast %cst_93 : f32 to vector<8x32xf32>
    %355 = arith.addf %354, %353 : vector<8x32xf32>
    %356 = arith.divf %354, %355 : vector<8x32xf32>
    %357 = arith.mulf %348, %331 : vector<8x32xf32>
    %358 = arith.mulf %342, %350 : vector<8x32xf32>
    %359 = arith.addf %357, %358 : vector<8x32xf32>
    %360 = math.tanh %359 : vector<8x32xf32>
    %361 = arith.mulf %356, %360 : vector<8x32xf32>
    %c80 = arith.constant 80 : index
    %c0_94 = arith.constant 0 : index
    %362 = vector.load %arg7[%c80, %c0_94] : memref<128x128xf32, #tpu.memory_space<vmem>>, vector<8x128xf32>
    %cst_95 = arith.constant dense<0.000000e+00> : vector<8x128xf32>
    %363 = tpu.matmul %361, %79, %cst_95 {dimension_numbers = #tpu.dot_dimension_numbers<[1], [0], [0], [1], [0, 0, 1, 1], [], []>} : vector<8x32xf32>, vector<32x128xf32>, vector<8x128xf32> -> vector<8x128xf32>
    %364 = arith.addf %362, %363 : vector<8x128xf32>
    %365 = vector.extract_strided_slice %364 {offsets = [0, 0], sizes = [8, 32], strides = [1, 1]} : vector<8x128xf32> to vector<8x32xf32>
    %366 = arith.negf %365 : vector<8x32xf32>
    %367 = math.exp %366 : vector<8x32xf32>
    %cst_96 = arith.constant 1.000000e+00 : f32
    %368 = vector.broadcast %cst_96 : f32 to vector<8x32xf32>
    %369 = arith.addf %368, %367 : vector<8x32xf32>
    %370 = arith.divf %368, %369 : vector<8x32xf32>
    %371 = vector.extract_strided_slice %364 {offsets = [0, 32], sizes = [8, 32], strides = [1, 1]} : vector<8x128xf32> to vector<8x32xf32>
    %372 = arith.negf %371 : vector<8x32xf32>
    %373 = math.exp %372 : vector<8x32xf32>
    %cst_97 = arith.constant 1.000000e+00 : f32
    %374 = vector.broadcast %cst_97 : f32 to vector<8x32xf32>
    %375 = arith.addf %374, %373 : vector<8x32xf32>
    %376 = arith.divf %374, %375 : vector<8x32xf32>
    %377 = vector.extract_strided_slice %364 {offsets = [0, 64], sizes = [8, 32], strides = [1, 1]} : vector<8x128xf32> to vector<8x32xf32>
    %378 = math.tanh %377 : vector<8x32xf32>
    %379 = vector.extract_strided_slice %364 {offsets = [0, 96], sizes = [8, 32], strides = [1, 1]} : vector<8x128xf32> to vector<8x32xf32>
    %380 = arith.negf %379 : vector<8x32xf32>
    %381 = math.exp %380 : vector<8x32xf32>
    %cst_98 = arith.constant 1.000000e+00 : f32
    %382 = vector.broadcast %cst_98 : f32 to vector<8x32xf32>
    %383 = arith.addf %382, %381 : vector<8x32xf32>
    %384 = arith.divf %382, %383 : vector<8x32xf32>
    %385 = arith.mulf %376, %359 : vector<8x32xf32>
    %386 = arith.mulf %370, %378 : vector<8x32xf32>
    %387 = arith.addf %385, %386 : vector<8x32xf32>
    %388 = math.tanh %387 : vector<8x32xf32>
    %389 = arith.mulf %384, %388 : vector<8x32xf32>
    %c88 = arith.constant 88 : index
    %c0_99 = arith.constant 0 : index
    %390 = vector.load %arg7[%c88, %c0_99] : memref<128x128xf32, #tpu.memory_space<vmem>>, vector<8x128xf32>
    %cst_100 = arith.constant dense<0.000000e+00> : vector<8x128xf32>
    %391 = tpu.matmul %389, %79, %cst_100 {dimension_numbers = #tpu.dot_dimension_numbers<[1], [0], [0], [1], [0, 0, 1, 1], [], []>} : vector<8x32xf32>, vector<32x128xf32>, vector<8x128xf32> -> vector<8x128xf32>
    %392 = arith.addf %390, %391 : vector<8x128xf32>
    %393 = vector.extract_strided_slice %392 {offsets = [0, 0], sizes = [8, 32], strides = [1, 1]} : vector<8x128xf32> to vector<8x32xf32>
    %394 = arith.negf %393 : vector<8x32xf32>
    %395 = math.exp %394 : vector<8x32xf32>
    %cst_101 = arith.constant 1.000000e+00 : f32
    %396 = vector.broadcast %cst_101 : f32 to vector<8x32xf32>
    %397 = arith.addf %396, %395 : vector<8x32xf32>
    %398 = arith.divf %396, %397 : vector<8x32xf32>
    %399 = vector.extract_strided_slice %392 {offsets = [0, 32], sizes = [8, 32], strides = [1, 1]} : vector<8x128xf32> to vector<8x32xf32>
    %400 = arith.negf %399 : vector<8x32xf32>
    %401 = math.exp %400 : vector<8x32xf32>
    %cst_102 = arith.constant 1.000000e+00 : f32
    %402 = vector.broadcast %cst_102 : f32 to vector<8x32xf32>
    %403 = arith.addf %402, %401 : vector<8x32xf32>
    %404 = arith.divf %402, %403 : vector<8x32xf32>
    %405 = vector.extract_strided_slice %392 {offsets = [0, 64], sizes = [8, 32], strides = [1, 1]} : vector<8x128xf32> to vector<8x32xf32>
    %406 = math.tanh %405 : vector<8x32xf32>
    %407 = vector.extract_strided_slice %392 {offsets = [0, 96], sizes = [8, 32], strides = [1, 1]} : vector<8x128xf32> to vector<8x32xf32>
    %408 = arith.negf %407 : vector<8x32xf32>
    %409 = math.exp %408 : vector<8x32xf32>
    %cst_103 = arith.constant 1.000000e+00 : f32
    %410 = vector.broadcast %cst_103 : f32 to vector<8x32xf32>
    %411 = arith.addf %410, %409 : vector<8x32xf32>
    %412 = arith.divf %410, %411 : vector<8x32xf32>
    %413 = arith.mulf %404, %387 : vector<8x32xf32>
    %414 = arith.mulf %398, %406 : vector<8x32xf32>
    %415 = arith.addf %413, %414 : vector<8x32xf32>
    %416 = math.tanh %415 : vector<8x32xf32>
    %417 = arith.mulf %412, %416 : vector<8x32xf32>
    %c96 = arith.constant 96 : index
    %c0_104 = arith.constant 0 : index
    %418 = vector.load %arg7[%c96, %c0_104] : memref<128x128xf32, #tpu.memory_space<vmem>>, vector<8x128xf32>
    %cst_105 = arith.constant dense<0.000000e+00> : vector<8x128xf32>
    %419 = tpu.matmul %417, %79, %cst_105 {dimension_numbers = #tpu.dot_dimension_numbers<[1], [0], [0], [1], [0, 0, 1, 1], [], []>} : vector<8x32xf32>, vector<32x128xf32>, vector<8x128xf32> -> vector<8x128xf32>
    %420 = arith.addf %418, %419 : vector<8x128xf32>
    %421 = vector.extract_strided_slice %420 {offsets = [0, 0], sizes = [8, 32], strides = [1, 1]} : vector<8x128xf32> to vector<8x32xf32>
    %422 = arith.negf %421 : vector<8x32xf32>
    %423 = math.exp %422 : vector<8x32xf32>
    %cst_106 = arith.constant 1.000000e+00 : f32
    %424 = vector.broadcast %cst_106 : f32 to vector<8x32xf32>
    %425 = arith.addf %424, %423 : vector<8x32xf32>
    %426 = arith.divf %424, %425 : vector<8x32xf32>
    %427 = vector.extract_strided_slice %420 {offsets = [0, 32], sizes = [8, 32], strides = [1, 1]} : vector<8x128xf32> to vector<8x32xf32>
    %428 = arith.negf %427 : vector<8x32xf32>
    %429 = math.exp %428 : vector<8x32xf32>
    %cst_107 = arith.constant 1.000000e+00 : f32
    %430 = vector.broadcast %cst_107 : f32 to vector<8x32xf32>
    %431 = arith.addf %430, %429 : vector<8x32xf32>
    %432 = arith.divf %430, %431 : vector<8x32xf32>
    %433 = vector.extract_strided_slice %420 {offsets = [0, 64], sizes = [8, 32], strides = [1, 1]} : vector<8x128xf32> to vector<8x32xf32>
    %434 = math.tanh %433 : vector<8x32xf32>
    %435 = vector.extract_strided_slice %420 {offsets = [0, 96], sizes = [8, 32], strides = [1, 1]} : vector<8x128xf32> to vector<8x32xf32>
    %436 = arith.negf %435 : vector<8x32xf32>
    %437 = math.exp %436 : vector<8x32xf32>
    %cst_108 = arith.constant 1.000000e+00 : f32
    %438 = vector.broadcast %cst_108 : f32 to vector<8x32xf32>
    %439 = arith.addf %438, %437 : vector<8x32xf32>
    %440 = arith.divf %438, %439 : vector<8x32xf32>
    %441 = arith.mulf %432, %415 : vector<8x32xf32>
    %442 = arith.mulf %426, %434 : vector<8x32xf32>
    %443 = arith.addf %441, %442 : vector<8x32xf32>
    %444 = math.tanh %443 : vector<8x32xf32>
    %445 = arith.mulf %440, %444 : vector<8x32xf32>
    %c104 = arith.constant 104 : index
    %c0_109 = arith.constant 0 : index
    %446 = vector.load %arg7[%c104, %c0_109] : memref<128x128xf32, #tpu.memory_space<vmem>>, vector<8x128xf32>
    %cst_110 = arith.constant dense<0.000000e+00> : vector<8x128xf32>
    %447 = tpu.matmul %445, %79, %cst_110 {dimension_numbers = #tpu.dot_dimension_numbers<[1], [0], [0], [1], [0, 0, 1, 1], [], []>} : vector<8x32xf32>, vector<32x128xf32>, vector<8x128xf32> -> vector<8x128xf32>
    %448 = arith.addf %446, %447 : vector<8x128xf32>
    %449 = vector.extract_strided_slice %448 {offsets = [0, 0], sizes = [8, 32], strides = [1, 1]} : vector<8x128xf32> to vector<8x32xf32>
    %450 = arith.negf %449 : vector<8x32xf32>
    %451 = math.exp %450 : vector<8x32xf32>
    %cst_111 = arith.constant 1.000000e+00 : f32
    %452 = vector.broadcast %cst_111 : f32 to vector<8x32xf32>
    %453 = arith.addf %452, %451 : vector<8x32xf32>
    %454 = arith.divf %452, %453 : vector<8x32xf32>
    %455 = vector.extract_strided_slice %448 {offsets = [0, 32], sizes = [8, 32], strides = [1, 1]} : vector<8x128xf32> to vector<8x32xf32>
    %456 = arith.negf %455 : vector<8x32xf32>
    %457 = math.exp %456 : vector<8x32xf32>
    %cst_112 = arith.constant 1.000000e+00 : f32
    %458 = vector.broadcast %cst_112 : f32 to vector<8x32xf32>
    %459 = arith.addf %458, %457 : vector<8x32xf32>
    %460 = arith.divf %458, %459 : vector<8x32xf32>
    %461 = vector.extract_strided_slice %448 {offsets = [0, 64], sizes = [8, 32], strides = [1, 1]} : vector<8x128xf32> to vector<8x32xf32>
    %462 = math.tanh %461 : vector<8x32xf32>
    %463 = vector.extract_strided_slice %448 {offsets = [0, 96], sizes = [8, 32], strides = [1, 1]} : vector<8x128xf32> to vector<8x32xf32>
    %464 = arith.negf %463 : vector<8x32xf32>
    %465 = math.exp %464 : vector<8x32xf32>
    %cst_113 = arith.constant 1.000000e+00 : f32
    %466 = vector.broadcast %cst_113 : f32 to vector<8x32xf32>
    %467 = arith.addf %466, %465 : vector<8x32xf32>
    %468 = arith.divf %466, %467 : vector<8x32xf32>
    %469 = arith.mulf %460, %443 : vector<8x32xf32>
    %470 = arith.mulf %454, %462 : vector<8x32xf32>
    %471 = arith.addf %469, %470 : vector<8x32xf32>
    %472 = math.tanh %471 : vector<8x32xf32>
    %473 = arith.mulf %468, %472 : vector<8x32xf32>
    %c112 = arith.constant 112 : index
    %c0_114 = arith.constant 0 : index
    %474 = vector.load %arg7[%c112, %c0_114] : memref<128x128xf32, #tpu.memory_space<vmem>>, vector<8x128xf32>
    %cst_115 = arith.constant dense<0.000000e+00> : vector<8x128xf32>
    %475 = tpu.matmul %473, %79, %cst_115 {dimension_numbers = #tpu.dot_dimension_numbers<[1], [0], [0], [1], [0, 0, 1, 1], [], []>} : vector<8x32xf32>, vector<32x128xf32>, vector<8x128xf32> -> vector<8x128xf32>
    %476 = arith.addf %474, %475 : vector<8x128xf32>
    %477 = vector.extract_strided_slice %476 {offsets = [0, 0], sizes = [8, 32], strides = [1, 1]} : vector<8x128xf32> to vector<8x32xf32>
    %478 = arith.negf %477 : vector<8x32xf32>
    %479 = math.exp %478 : vector<8x32xf32>
    %cst_116 = arith.constant 1.000000e+00 : f32
    %480 = vector.broadcast %cst_116 : f32 to vector<8x32xf32>
    %481 = arith.addf %480, %479 : vector<8x32xf32>
    %482 = arith.divf %480, %481 : vector<8x32xf32>
    %483 = vector.extract_strided_slice %476 {offsets = [0, 32], sizes = [8, 32], strides = [1, 1]} : vector<8x128xf32> to vector<8x32xf32>
    %484 = arith.negf %483 : vector<8x32xf32>
    %485 = math.exp %484 : vector<8x32xf32>
    %cst_117 = arith.constant 1.000000e+00 : f32
    %486 = vector.broadcast %cst_117 : f32 to vector<8x32xf32>
    %487 = arith.addf %486, %485 : vector<8x32xf32>
    %488 = arith.divf %486, %487 : vector<8x32xf32>
    %489 = vector.extract_strided_slice %476 {offsets = [0, 64], sizes = [8, 32], strides = [1, 1]} : vector<8x128xf32> to vector<8x32xf32>
    %490 = math.tanh %489 : vector<8x32xf32>
    %491 = vector.extract_strided_slice %476 {offsets = [0, 96], sizes = [8, 32], strides = [1, 1]} : vector<8x128xf32> to vector<8x32xf32>
    %492 = arith.negf %491 : vector<8x32xf32>
    %493 = math.exp %492 : vector<8x32xf32>
    %cst_118 = arith.constant 1.000000e+00 : f32
    %494 = vector.broadcast %cst_118 : f32 to vector<8x32xf32>
    %495 = arith.addf %494, %493 : vector<8x32xf32>
    %496 = arith.divf %494, %495 : vector<8x32xf32>
    %497 = arith.mulf %488, %471 : vector<8x32xf32>
    %498 = arith.mulf %482, %490 : vector<8x32xf32>
    %499 = arith.addf %497, %498 : vector<8x32xf32>
    %500 = math.tanh %499 : vector<8x32xf32>
    %501 = arith.mulf %496, %500 : vector<8x32xf32>
    %c120 = arith.constant 120 : index
    %c0_119 = arith.constant 0 : index
    %502 = vector.load %arg7[%c120, %c0_119] : memref<128x128xf32, #tpu.memory_space<vmem>>, vector<8x128xf32>
    %cst_120 = arith.constant dense<0.000000e+00> : vector<8x128xf32>
    %503 = tpu.matmul %501, %79, %cst_120 {dimension_numbers = #tpu.dot_dimension_numbers<[1], [0], [0], [1], [0, 0, 1, 1], [], []>} : vector<8x32xf32>, vector<32x128xf32>, vector<8x128xf32> -> vector<8x128xf32>
    %504 = arith.addf %502, %503 : vector<8x128xf32>
    %505 = vector.extract_strided_slice %504 {offsets = [0, 0], sizes = [8, 32], strides = [1, 1]} : vector<8x128xf32> to vector<8x32xf32>
    %506 = arith.negf %505 : vector<8x32xf32>
    %507 = math.exp %506 : vector<8x32xf32>
    %cst_121 = arith.constant 1.000000e+00 : f32
    %508 = vector.broadcast %cst_121 : f32 to vector<8x32xf32>
    %509 = arith.addf %508, %507 : vector<8x32xf32>
    %510 = arith.divf %508, %509 : vector<8x32xf32>
    %511 = vector.extract_strided_slice %504 {offsets = [0, 32], sizes = [8, 32], strides = [1, 1]} : vector<8x128xf32> to vector<8x32xf32>
    %512 = arith.negf %511 : vector<8x32xf32>
    %513 = math.exp %512 : vector<8x32xf32>
    %cst_122 = arith.constant 1.000000e+00 : f32
    %514 = vector.broadcast %cst_122 : f32 to vector<8x32xf32>
    %515 = arith.addf %514, %513 : vector<8x32xf32>
    %516 = arith.divf %514, %515 : vector<8x32xf32>
    %517 = vector.extract_strided_slice %504 {offsets = [0, 64], sizes = [8, 32], strides = [1, 1]} : vector<8x128xf32> to vector<8x32xf32>
    %518 = math.tanh %517 : vector<8x32xf32>
    %519 = vector.extract_strided_slice %504 {offsets = [0, 96], sizes = [8, 32], strides = [1, 1]} : vector<8x128xf32> to vector<8x32xf32>
    %520 = arith.negf %519 : vector<8x32xf32>
    %521 = math.exp %520 : vector<8x32xf32>
    %cst_123 = arith.constant 1.000000e+00 : f32
    %522 = vector.broadcast %cst_123 : f32 to vector<8x32xf32>
    %523 = arith.addf %522, %521 : vector<8x32xf32>
    %524 = arith.divf %522, %523 : vector<8x32xf32>
    %525 = arith.mulf %516, %499 : vector<8x32xf32>
    %526 = arith.mulf %510, %518 : vector<8x32xf32>
    %527 = arith.addf %525, %526 : vector<8x32xf32>
    %528 = math.tanh %527 : vector<8x32xf32>
    %529 = arith.mulf %524, %528 : vector<8x32xf32>
    %c120_124 = arith.constant 120 : index
    %c0_125 = arith.constant 0 : index
    %530 = vector.load %arg0[%c120_124, %c0_125] : memref<160x16xf32, #tpu.memory_space<vmem>>, vector<8x16xf32>
    %c0_126 = arith.constant 0 : index
    %c128 = arith.constant 128 : index
    %531 = vector.load %arg2[%c0_126, %c128] : memref<16x256xf32, #tpu.memory_space<vmem>>, vector<16x128xf32>
    %cst_127 = arith.constant dense<0.000000e+00> : vector<8x128xf32>
    %532 = tpu.matmul %530, %531, %cst_127 {dimension_numbers = #tpu.dot_dimension_numbers<[1], [0], [0], [1], [0, 0, 1, 1], [], []>} : vector<8x16xf32>, vector<16x128xf32>, vector<8x128xf32> -> vector<8x128xf32>
    %c2 = arith.constant 2 : index
    %c0_128 = arith.constant 0 : index
    %533 = vector.load %arg5[%c2, %c0_128] : memref<4x128xf32, #tpu.memory_space<vmem>>, vector<1x128xf32>
    %534 = vector.broadcast %533 : vector<1x128xf32> to vector<8x128xf32>
    %535 = arith.addf %532, %534 : vector<8x128xf32>
    %536 = vector.extract_strided_slice %535 {offsets = [0, 0], sizes = [8, 32], strides = [1, 1]} : vector<8x128xf32> to vector<8x32xf32>
    %537 = arith.negf %536 : vector<8x32xf32>
    %538 = math.exp %537 : vector<8x32xf32>
    %cst_129 = arith.constant 1.000000e+00 : f32
    %539 = vector.broadcast %cst_129 : f32 to vector<8x32xf32>
    %540 = arith.addf %539, %538 : vector<8x32xf32>
    %541 = arith.divf %539, %540 : vector<8x32xf32>
    %542 = vector.extract_strided_slice %535 {offsets = [0, 64], sizes = [8, 32], strides = [1, 1]} : vector<8x128xf32> to vector<8x32xf32>
    %543 = math.tanh %542 : vector<8x32xf32>
    %544 = vector.extract_strided_slice %535 {offsets = [0, 96], sizes = [8, 32], strides = [1, 1]} : vector<8x128xf32> to vector<8x32xf32>
    %545 = arith.negf %544 : vector<8x32xf32>
    %546 = math.exp %545 : vector<8x32xf32>
    %cst_130 = arith.constant 1.000000e+00 : f32
    %547 = vector.broadcast %cst_130 : f32 to vector<8x32xf32>
    %548 = arith.addf %547, %546 : vector<8x32xf32>
    %549 = arith.divf %547, %548 : vector<8x32xf32>
    %550 = arith.mulf %541, %543 : vector<8x32xf32>
    %551 = math.tanh %550 : vector<8x32xf32>
    %552 = arith.mulf %549, %551 : vector<8x32xf32>
    %c0_131 = arith.constant 0 : index
    %c0_132 = arith.constant 0 : index
    %553 = vector.load %arg4[%c0_131, %c0_132] : memref<192x128xf32, #tpu.memory_space<vmem>>, vector<128x128xf32>
    %cst_133 = arith.constant dense<0.000000e+00> : vector<8x128xf32>
    %554 = tpu.matmul %71, %553, %cst_133 {dimension_numbers = #tpu.dot_dimension_numbers<[1], [0], [0], [1], [0, 0, 1, 1], [], []>} : vector<8x128xf32>, vector<128x128xf32>, vector<8x128xf32> -> vector<8x128xf32>
    %c128_134 = arith.constant 128 : index
    %c0_135 = arith.constant 0 : index
    %555 = vector.load %arg4[%c128_134, %c0_135] : memref<192x128xf32, #tpu.memory_space<vmem>>, vector<32x128xf32>
    %cst_136 = arith.constant dense<0.000000e+00> : vector<8x128xf32>
    %556 = tpu.matmul %529, %555, %cst_136 {dimension_numbers = #tpu.dot_dimension_numbers<[1], [0], [0], [1], [0, 0, 1, 1], [], []>} : vector<8x32xf32>, vector<32x128xf32>, vector<8x128xf32> -> vector<8x128xf32>
    %557 = arith.addf %554, %556 : vector<8x128xf32>
    %c160 = arith.constant 160 : index
    %c0_137 = arith.constant 0 : index
    %558 = vector.load %arg4[%c160, %c0_137] : memref<192x128xf32, #tpu.memory_space<vmem>>, vector<32x128xf32>
    %cst_138 = arith.constant dense<0.000000e+00> : vector<8x128xf32>
    %559 = tpu.matmul %552, %558, %cst_138 {dimension_numbers = #tpu.dot_dimension_numbers<[1], [0], [0], [1], [0, 0, 1, 1], [], []>} : vector<8x32xf32>, vector<32x128xf32>, vector<8x128xf32> -> vector<8x128xf32>
    %560 = arith.addf %557, %559 : vector<8x128xf32>
    %c3 = arith.constant 3 : index
    %c0_139 = arith.constant 0 : index
    %561 = vector.load %arg5[%c3, %c0_139] : memref<4x128xf32, #tpu.memory_space<vmem>>, vector<1x128xf32>
    %562 = vector.broadcast %561 : vector<1x128xf32> to vector<8x128xf32>
    %563 = arith.addf %560, %562 : vector<8x128xf32>
    %c0_140 = arith.constant 0 : index
    %c0_141 = arith.constant 0 : index
    %564 = vector.load %arg6[%c0_140, %c0_141] : memref<8x128xf32, #tpu.memory_space<vmem>>, vector<8x128xf32>
    tpu.vector_store %arg6[%c0_140, %c0_141], %563 {strides = array<i32>} : memref<8x128xf32, #tpu.memory_space<vmem>>, vector<8x128xf32>,
    return
  }
}

</mosaic_0001>

<bundles_post_ra>
// kernel: parallel_cnn_blstm_forward.1
= control target key start
LH: loop header
LB: loop body
LE: loop exit
PB: predicated region body
PF: predicated region fallthrough
CT: control target
= control target key end

     0   :  { %vm44_vm0 = vcmask 130048   ;;  %v4161_v28 = vmov 0.0   ;;  %vm4162_vm1 = vmmov 0   ;;  %s4163_s24 = smov 64   ;;  %s4164_s25 = smov 32   ;;  %vm1281_vm7 = vcmask 261120   ;;  %s5021_s1 = inlined_call_operand.vmem [shape: f32[80,128], index: 1, kind: input, shape index: {}]   ;;  %s5022_s0 = inlined_call_operand.vmem [shape: f32[160,16], index: 0, kind: input, shape index: {}]   ;;  %s5023_s2 = inlined_call_operand.vmem [shape: f32[16,256], index: 2, kind: input, shape index: {}]   ;;  %s5024_s3 = inlined_call_operand.vmem [shape: f32[32,128], index: 3, kind: input, shape index: {}]   ;;  %s5025_s5 = inlined_call_operand.vmem [shape: f32[4,128], index: 5, kind: input, shape index: {}]   ;;  %s5026_s4 = inlined_call_operand.vmem [shape: f32[192,128], index: 4, kind: input, shape index: {}]   ;;  %s5027_s6 = inlined_call_operand.vmem [shape: f32[8,128], index: 6, kind: output, shape index: {}]  }
   0x1   :  { %v43_v0 = vld [vmem:[%s5021_s1 + $0x18] sm:$0xff]  ;;  %v42_v1 = vld [vmem:[%s5021_s1 + $0x10] sm:$0xff]  ;;  %v4210_v2 = vld [vmem:[%s5022_s0 + $0x8] sm:$0xff]  ;;  %s4165_s22 = smov 96  }
   0x2   :  { %3603 = vmatprep.subr.mxu0 %v43_v0  ;;  %4011 = vmatprep.subr.mxu1 %v43_v0  ;;  %v4215_v3 = vld [vmem:[%s5022_s0 + $0x68] sm:$0xff]  ;;  %v4220_v4 = vld [vmem:[%s5022_s0 + $0x10] sm:$0xff]  ;;  %v4233_v7 = vld [vmem:[%s5022_s0 + $0x18] sm:$0xff] }
   0x3   :  { %3604 = vmatpush3.msra.mxu0 %v43_v0  ;;  %4013 = vmatpush3.msra.mxu1 %v43_v0  ;;  %v4225_v5 = vld [vmem:[%s5022_s0 + $0x70] sm:$0xff]  ;;  %v399_v6 = vld [vmem:[%s5021_s1 + $0x28] sm:$0xff]  ;;  %v4242_v8 = vld [vmem:[%s5022_s0 + $0x78] sm:$0xff] }
   0x4   :  { %3605 = vmatprep.subr.mxu0 %v42_v1  ;;  %4012 = vmatprep.subr.mxu1 %v42_v1  ;;  %v40_v9 = vld [vmem:[%s5021_s1 + $0x8] sm:$0xff]  ;;  %v398_v10 = vld [vmem:[%s5021_s1 + $0x20] sm:$0xff]  ;;  %v4290_v16 = vld [vmem:[%s5022_s0 + $0x30] sm:$0xff] }
   0x5   :  { %3606 = vmatpush3.msra.mxu0 %v42_v1  ;;  %4014 = vmatpush3.msra.mxu1 %v42_v1  ;;  %v4259_v11 = vld [vmem:[%s5022_s0 + $0x20] sm:$0xff]  ;;  %v4271_v13 = vld [vmem:[%s5022_s0 + $0x28] sm:$0xff]  ;;  %v4297_v17 = vld [vmem:[%s5022_s0 + $0x38] sm:$0xff] }
   0x6   :  { %3607 = vmatprep.mubr.msk.f32.mxu0 %vm44_vm0, %v4210_v2  ;;  %3625 = vmatprep.mubr.msk.f32.mxu1 %vm44_vm0, %v4215_v3  ;;  %v4264_v12 = vld [vmem:[%s5022_s0 + $0x80] sm:$0xff]  ;;  %v622_v18 = vld [vmem:[%s5021_s1 + $0x38] sm:$0xff]  ;;  %v845_v19 = vld [vmem:[%s5021_s1 + $0x48] sm:$0xff] }
   0x7   :  { %3608 = vmatmul.mubr.msk.f32.vlgmr.msra.gmra.mxu0 %vm44_vm0, %v4220_v4  ;;  %3626 = vmatmul.mubr.msk.f32.vlgmr.msra.gmra.mxu1 %vm44_vm0, %v4225_v5  ;;  %v39_v14 = vld [vmem:[%s5021_s1] sm:$0xff]  ;;  %v4321_v21 = vld [vmem:[%s5022_s0 + $0x48] sm:$0xff]  ;;  %v621_v22 = vld [vmem:[%s5021_s1 + $0x30] sm:$0xff] }
   0x8   :  { %3659 = vmatprep.subr.mxu0 %v399_v6  ;;  %3610 = vmatprep.mubr.msk.f32.mxu0 %vm44_vm0, %v4233_v7  ;;  %v4279_v15 = vld [vmem:[%s5022_s0] sm:$0xff]  ;;  %v4337_v23 = vld [vmem:[%s5022_s0 + $0x50] sm:$0xff]  ;;  %v4342_v24 = vld [vmem:[%s5022_s0 + $0x58] sm:$0xff] }
   0x9   :  { %3660 = vmatpush3.msra.mxu0 %v399_v6  ;;  %3628 = vmatprep.mubr.msk.f32.mxu1 %vm44_vm0, %v4242_v8  ;;  %v4316_v20 = vld [vmem:[%s5022_s0 + $0x40] sm:$0xff]  ;;  %v1109_v25 = vld [vmem:[%s5023_s2 + $0x10] sm:$0xff]  ;;  %v397_v30 = vld [vmem:[%s5022_s0 + $0x88] sm:$0xff] }
   0xa   :  { %3631 = vmatprep.subr.mxu1 %v40_v9  ;;  %3661 = vmatprep.subr.mxu0 %v398_v10  ;;  %v4358_v26 = vld [vmem:[%s5022_s0 + $0x60] sm:$0xff]  ;;  %v4445_v31 = vld [vmem:[%s5024_s3 + $0x18] sm:$0xff]  ;;  %v4454_v32 = vld [vmem:[%s5024_s3 + $0x10] sm:$0xff] }
   0xb   :  { %3611 = vmatmul.mubr.msk.f32.gmra.mxu0 %vm44_vm0, %v4259_v11  ;;  %3629 = vmatmul.mubr.msk.f32.gmra.mxu1 %vm44_vm0, %v4264_v12  ;;  %v844_v27 = vld [vmem:[%s5021_s1 + $0x40] sm:$0xff]  ;;  %v4470_v33 = vld [vmem:[%s5024_s3 + $0x8] sm:$0xff]  ;;  %v620_v35 = vld [vmem:[%s5022_s0 + $0x90] sm:$0xff] }
   0xc   :  { %3632 = vmatpush3.msra.mxu1 %v40_v9  ;;  %3613 = vmatprep.mubr.msk.f32.mxu0 %vm44_vm0, %v4271_v13  ;;  %v1108_v29 = vld [vmem:[%s5023_s2] sm:$0xff]  ;;  %v843_v36 = vld [vmem:[%s5022_s0 + $0x98] sm:$0xff] }
   0xd   :  { %3633 = vmatprep.subr.mxu1 %v39_v14  ;;  %3635 = vmatprep.mubr.msk.f32.mxu1 %vm44_vm0, %v4279_v15  ;;  %v4485_v34 = vld [vmem:[%s5024_s3] sm:$0xff] }
   0xe   :  { %3634 = vmatpush3.msra.mxu1 %v39_v14  ;;  %3662 = vmatpush3.msra.mxu0 %v398_v10 }
   0xf   :  { %3614 = vmatmul.mubr.msk.f32.gmra.mxu0 %vm44_vm0, %v4290_v16  ;;  %3636 = vmatmul.mubr.msk.f32.vlgmr.msra.gmra.mxu1 %vm44_vm0, %v4210_v2 }
  0x10   :  { %3616 = vmatprep.mubr.msk.f32.mxu0 %vm44_vm0, %v4297_v17  ;;  %3638 = vmatprep.mubr.msk.f32.mxu1 %vm44_vm0, %v4220_v4 }
  0x11   :  { %3687 = vmatprep.subr.mxu1 %v622_v18  ;;  %3715 = vmatprep.subr.mxu0 %v845_v19 }
  0x12   :  { %3688 = vmatpush3.msra.mxu1 %v622_v18 }
  0x13   :  { %3617 = vmatmul.mubr.msk.f32.gmra.mxu0 %vm44_vm0, %v4316_v20  ;;  %3639 = vmatmul.mubr.msk.f32.gmra.mxu1 %vm44_vm0, %v4233_v7 }
  0x14   :  { %3619 = vmatprep.mubr.msk.f32.mxu0 %vm44_vm0, %v4321_v21  ;;  %3641 = vmatprep.mubr.msk.f32.mxu1 %vm44_vm0, %v4259_v11 }
  0x15   :  { %3689 = vmatprep.subr.mxu1 %v621_v22 }
  0x16   :  { %3690 = vmatpush3.msra.mxu1 %v621_v22 }
  0x17   :  { %3620 = vmatmul.mubr.msk.f32.gmra.mxu0 %vm44_vm0, %v4337_v23  ;;  %3642 = vmatmul.mubr.msk.f32.gmra.mxu1 %vm44_vm0, %v4271_v13 }
  0x18   :  { %3622 = vmatprep.mubr.msk.f32.mxu0 %vm44_vm0, %v4342_v24  ;;  %3644 = vmatprep.mubr.msk.f32.mxu1 %vm44_vm0, %v4290_v16 }
  0x19   :  { %3743 = vmatprep.subr.mxu1 %v1109_v25 }
  0x1b   :  { %3623 = vmatmul.mubr.msk.f32.gmra.mxu0 %vm44_vm0, %v4358_v26  ;;  %3645 = vmatmul.mubr.msk.f32.gmra.mxu1 %vm44_vm0, %v4297_v17 }
  0x1c   :  { %3647 = vmatprep.mubr.msk.f32.mxu1 %vm44_vm0, %v4316_v20  ;;  %3663 = vmatprep.mubr.msk.f32.mxu0 %vm44_vm0, %v4220_v4 }
  0x1f   :  { %3648 = vmatmul.mubr.msk.f32.gmra.mxu1 %vm44_vm0, %v4321_v21  ;;  %3664 = vmatmul.mubr.msk.f32.vlgmr.msra.gmra.mxu0 %vm44_vm0, %v4233_v7 }
  0x20   :  { %3716 = vmatpush3.msra.mxu0 %v845_v19  ;;  %3650 = vmatprep.mubr.msk.f32.mxu1 %vm44_vm0, %v4337_v23 }
  0x21   :  { %3666 = vmatprep.mubr.msk.f32.mxu0 %vm44_vm0, %v4259_v11  ;;  %3717 = vmatprep.subr.mxu0 %v844_v27 }
  0x22   :  { %3718 = vmatpush3.msra.mxu0 %v844_v27 }
  0x23   :  { %3651 = vmatmul.mubr.msk.f32.gmra.mxu1 %vm44_vm0, %v4342_v24  ;;  %3667 = vmatmul.mubr.msk.f32.gmra.mxu0 %vm44_vm0, %v4271_v13 }
  0x24   :  { %3653 = vmatprep.mubr.msk.f32.mxu1 %vm44_vm0, %v4358_v26  ;;  %3669 = vmatprep.mubr.msk.f32.mxu0 %vm44_vm0, %v4290_v16 }
  0x25   :  { %3771 = vmatprep.subr.mxu0 %v4161_v28 }
  0x27   :  { %3654 = vmatmul.mubr.msk.f32.gmra.mxu1 %vm44_vm0, %v4215_v3  ;;  %3670 = vmatmul.mubr.msk.f32.gmra.mxu0 %vm44_vm0, %v4297_v17 }
  0x28   :  { %3656 = vmatprep.mubr.msk.f32.mxu1 %vm44_vm0, %v4225_v5  ;;  %3672 = vmatprep.mubr.msk.f32.mxu0 %vm44_vm0, %v4316_v20 }
  0x2b   :  { %3657 = vmatmul.mubr.msk.f32.gmra.mxu1 %vm44_vm0, %v4242_v8  ;;  %3673 = vmatmul.mubr.msk.f32.gmra.mxu0 %vm44_vm0, %v4321_v21 }
  0x2c   :  { %3675 = vmatprep.mubr.msk.f32.mxu0 %vm44_vm0, %v4337_v23  ;;  %3691 = vmatprep.mubr.msk.f32.mxu1 %vm44_vm0, %v4233_v7 }
  0x2f   :  { %3676 = vmatmul.mubr.msk.f32.gmra.mxu0 %vm44_vm0, %v4342_v24  ;;  %3692 = vmatmul.mubr.msk.f32.vlgmr.msra.gmra.mxu1 %vm44_vm0, %v4259_v11 }
  0x30   :  { %3678 = vmatprep.mubr.msk.f32.mxu0 %vm44_vm0, %v4358_v26  ;;  %3694 = vmatprep.mubr.msk.f32.mxu1 %vm44_vm0, %v4271_v13 }
  0x31   :  { %3744 = vmatpush3.msra.mxu1 %v1109_v25 }
  0x32   :  { %3745 = vmatprep.subr.mxu1 %v1108_v29 }
  0x33   :  { %3679 = vmatmul.mubr.msk.f32.gmra.mxu0 %vm44_vm0, %v4215_v3  ;;  %3695 = vmatmul.mubr.msk.f32.gmra.mxu1 %vm44_vm0, %v4290_v16 }
  0x34   :  { %3681 = vmatprep.mubr.msk.f32.mxu0 %vm44_vm0, %v4225_v5  ;;  %3697 = vmatprep.mubr.msk.f32.mxu1 %vm44_vm0, %v4297_v17 }
  0x35   :  { %3746 = vmatpush3.msra.mxu1 %v1108_v29 }
  0x36   :  { %3782 = vmatprep.subr.mxu1 %v4161_v28 }
  0x37   :  { %3682 = vmatmul.mubr.msk.f32.gmra.mxu0 %vm44_vm0, %v4242_v8  ;;  %3698 = vmatmul.mubr.msk.f32.gmra.mxu1 %vm44_vm0, %v4316_v20 }
  0x38   :  { %3684 = vmatprep.mubr.msk.f32.mxu0 %vm44_vm0, %v4264_v12  ;;  %3700 = vmatprep.mubr.msk.f32.mxu1 %vm44_vm0, %v4321_v21 }
  0x3b   :  { %3685 = vmatmul.mubr.msk.f32.gmra.mxu0 %vm44_vm0, %v397_v30  ;;  %3701 = vmatmul.mubr.msk.f32.gmra.mxu1 %vm44_vm0, %v4337_v23 }
  0x3c   :  { %3703 = vmatprep.mubr.msk.f32.mxu1 %vm44_vm0, %v4342_v24  ;;  %3719 = vmatprep.mubr.msk.f32.mxu0 %vm44_vm0, %v4259_v11 }
  0x3f   :  { %3704 = vmatmul.mubr.msk.f32.gmra.mxu1 %vm44_vm0, %v4358_v26  ;;  %3720 = vmatmul.mubr.msk.f32.vlgmr.msra.gmra.mxu0 %vm44_vm0, %v4271_v13 }
  0x40   :  { %3772 = vmatpush3.msra.mxu0 %v4445_v31  ;;  %3706 = vmatprep.mubr.msk.f32.mxu1 %vm44_vm0, %v4215_v3 }
  0x41   :  { %3722 = vmatprep.mubr.msk.f32.mxu0 %vm44_vm0, %v4290_v16  ;;  %3773 = vmatprep.subr.mxu0 %v4161_v28 }
  0x42   :  { %3774 = vmatpush3.msra.mxu0 %v4454_v32 }
  0x43   :  { %3707 = vmatmul.mubr.msk.f32.gmra.mxu1 %vm44_vm0, %v4225_v5  ;;  %3723 = vmatmul.mubr.msk.f32.gmra.mxu0 %vm44_vm0, %v4297_v17 }
  0x44   :  { %3709 = vmatprep.mubr.msk.f32.mxu1 %vm44_vm0, %v4242_v8  ;;  %3725 = vmatprep.mubr.msk.f32.mxu0 %vm44_vm0, %v4316_v20 }
  0x45   :  { %3775 = vmatprep.subr.mxu0 %v4161_v28 }
  0x46   :  { %3776 = vmatpush3.msra.mxu0 %v4470_v33 }
  0x47   :  { %3710 = vmatmul.mubr.msk.f32.gmra.mxu1 %vm44_vm0, %v4264_v12  ;;  %3726 = vmatmul.mubr.msk.f32.gmra.mxu0 %vm44_vm0, %v4321_v21 }
  0x48   :  { %3728 = vmatprep.mubr.msk.f32.mxu0 %vm44_vm0, %v4337_v23  ;;  %3712 = vmatprep.mubr.msk.f32.mxu1 %vm44_vm0, %v397_v30 }
  0x49   :  { %3777 = vmatprep.subr.mxu0 %v4161_v28 }
  0x4a   :  { %3778 = vmatpush3.msra.mxu0 %v4485_v34 }
  0x4b   :  { %3729 = vmatmul.mubr.msk.f32.gmra.mxu0 %vm44_vm0, %v4342_v24  ;;  %3713 = vmatmul.mubr.msk.f32.gmra.mxu1 %vm44_vm0, %v620_v35 }
  0x4c   :  { %3731 = vmatprep.mubr.msk.f32.mxu0 %vm44_vm0, %v4358_v26  ;;  %3747 = vmatprep.mubr.msk.f32.mxu1 %vm44_vm0, %v4279_v15 }
  0x4d   :  { %3793 = vmatprep.subr.mxu0 %v4161_v28 }
  0x4f   :  { %3732 = vmatmul.mubr.msk.f32.gmra.mxu0 %vm44_vm0, %v4215_v3  ;;  %3748 = vmatmul.mubr.msk.f32.vlgmr.msra.gmra.mxu1 %vm44_vm0, %v4210_v2 }
  0x50   :  { %3734 = vmatprep.mubr.msk.f32.mxu0 %vm44_vm0, %v4225_v5  ;;  %3783 = vmatpush3.msra.mxu1 %v4445_v31 }
  0x51   :  { %3750 = vmatprep.mubr.msk.f32.mxu1 %vm44_vm0, %v4220_v4  ;;  %3784 = vmatprep.subr.mxu1 %v4161_v28 }
  0x52   :  { %3785 = vmatpush3.msra.mxu1 %v4454_v32 }
  0x53   :  { %3735 = vmatmul.mubr.msk.f32.gmra.mxu0 %vm44_vm0, %v4242_v8  ;;  %3751 = vmatmul.mubr.msk.f32.gmra.mxu1 %vm44_vm0, %v4233_v7 }
  0x54   :  { %3737 = vmatprep.mubr.msk.f32.mxu0 %vm44_vm0, %v4264_v12  ;;  %3753 = vmatprep.mubr.msk.f32.mxu1 %vm44_vm0, %v4259_v11 }
  0x55   :  { %3786 = vmatprep.subr.mxu1 %v4161_v28 }
  0x56   :  { %3787 = vmatpush3.msra.mxu1 %v4470_v33 }
  0x57   :  { %3738 = vmatmul.mubr.msk.f32.gmra.mxu0 %vm44_vm0, %v397_v30  ;;  %3754 = vmatmul.mubr.msk.f32.gmra.mxu1 %vm44_vm0, %v4271_v13 }
  0x58   :  { %3740 = vmatprep.mubr.msk.f32.mxu0 %vm44_vm0, %v620_v35  ;;  %3756 = vmatprep.mubr.msk.f32.mxu1 %vm44_vm0, %v4290_v16 }
  0x59   :  { %3788 = vmatprep.subr.mxu1 %v4161_v28 }
  0x5a   :  { %3789 = vmatpush3.msra.mxu1 %v4485_v34 }
  0x5b   :  { %3741 = vmatmul.mubr.msk.f32.gmra.mxu0 %vm44_vm0, %v843_v36  ;;  %3757 = vmatmul.mubr.msk.f32.gmra.mxu1 %vm44_vm0, %v4297_v17 }
  0x5c   :  { %3779 = vmatprep.mubr.msk.f32.mxu0 %vm4162_vm1, %v4161_v28  ;;  %3759 = vmatprep.mubr.msk.f32.mxu1 %vm44_vm0, %v4316_v20 }
  0x5d   :  { %3804 = vmatprep.subr.mxu1 %v4161_v28 }
  0x5f   :  { %3780 = vmatmul.mubr.f32.vlgmr.msra.gmra.mxu0 %v4161_v28  ;;  %3760 = vmatmul.mubr.msk.f32.gmra.mxu1 %vm44_vm0, %v4321_v21 }
  0x60   :  { %3762 = vmatprep.mubr.msk.f32.mxu1 %vm44_vm0, %v4337_v23  ;;  %3794 = vmatpush3.msra.mxu0 %v4445_v31 }
  0x61   :  { %3795 = vmatprep.subr.mxu0 %v4161_v28  ;;  %3801 = vmatprep.mubr.msk.f32.mxu0 %vm4162_vm1, %v4161_v28 }
  0x62   :  { %3796 = vmatpush3.msra.mxu0 %v4454_v32 }
  0x63   :  { %3763 = vmatmul.mubr.msk.f32.gmra.mxu1 %vm44_vm0, %v4342_v24  ;;  %3797 = vmatprep.subr.mxu0 %v4161_v28 }
  0x64   :  { %3765 = vmatprep.mubr.msk.f32.mxu1 %vm44_vm0, %v4358_v26  ;;  %3798 = vmatpush3.msra.mxu0 %v4470_v33 }
  0x65   :  { %3799 = vmatprep.subr.mxu0 %v4161_v28 }
  0x66   :  { %3800 = vmatpush3.msra.mxu0 %v4485_v34 }
  0x67   :  { %3766 = vmatmul.mubr.msk.f32.gmra.mxu1 %vm44_vm0, %v4215_v3  ;;  %3815 = vmatprep.subr.mxu0 %v4161_v28 }
  0x68   :  { %3768 = vmatprep.mubr.msk.f32.mxu1 %vm44_vm0, %v4225_v5 }
  0x6b   :  { %3769 = vmatmul.mubr.msk.f32.gmra.mxu1 %vm44_vm0, %v4242_v8 }
  0x6c   :  { %3790 = vmatprep.mubr.msk.f32.mxu1 %vm4162_vm1, %v4161_v28 }
  0xc7   :  { %v3609_v37 = vpop.f32.mrf.mxu0  ;;  %v3627_v38 = vpop.f32.mrf.mxu1 }
  0xc9   :  { %v159_v39 = vpop.f32.mrf.mxu0  ;;  %v219_v40 = vpop.f32.mrf.mxu1 }
  0xcb   :  { %v3612_v41 = vpop.f32.mrf.mxu0  ;;  %v3630_v42 = vpop.f32.mrf.mxu1 }
  0xcd   :  { %v169_v43 = vpop.f32.mrf.mxu0  ;;  %v229_v44 = vpop.f32.mrf.mxu1 }
  0xcf   :  { %v3615_v45 = vpop.f32.mrf.mxu0  ;;  %v3637_v46 = vpop.f32.mrf.mxu1 }
  0xd0   :  { %v311_v47 = vadd.f32 %v3637_v46, %v3609_v37 }
  0xd1   :  { %v179_v48 = vpop.f32.mrf.mxu0  ;;  %v305_v49 = vpop.f32.mrf.mxu1 }
  0xd2   :  { %v306_v50 = vadd.f32 %v305_v49, %v159_v39 }
  0xd3   :  { %v3618_v51 = vpop.f32.mrf.mxu0  ;;  %v3640_v52 = vpop.f32.mrf.mxu1 }
  0xd4   :  { %v321_v53 = vadd.f32 %v3640_v52, %v3612_v41 }
  0xd5   :  { %v189_v54 = vpop.f32.mrf.mxu0  ;;  %v315_v55 = vpop.f32.mrf.mxu1 }
  0xd6   :  { %v316_v56 = vadd.f32 %v315_v55, %v169_v43 }
  0xd7   :  { %v3621_v57 = vpop.f32.mrf.mxu0  ;;  %v3643_v58 = vpop.f32.mrf.mxu1 }
  0xd8   :  { %v331_v59 = vadd.f32 %v3643_v58, %v3615_v45 }
  0xd9   :  { %v199_v60 = vpop.f32.mrf.mxu0  ;;  %v325_v61 = vpop.f32.mrf.mxu1 }
  0xda   :  { %v326_v62 = vadd.f32 %v325_v61, %v179_v48 }
  0xdb   :  { %v3624_v63 = vpop.f32.mrf.mxu0  ;;  %v3646_v0 = vpop.f32.mrf.mxu1 }
  0xdc   :  { %v341_v1 = vadd.f32 %v3646_v0, %v3618_v51 }
  0xdd   :  { %v209_v2 = vpop.f32.mrf.mxu0  ;;  %v335_v3 = vpop.f32.mrf.mxu1 }
  0xde   :  { %v336_v4 = vadd.f32 %v335_v3, %v189_v54 }
  0xdf   :  { %v3649_v5 = vpop.f32.mrf.mxu1  ;;  %v3665_v6 = vpop.f32.mrf.mxu0 }
  0xe0   :  { %v351_v7 = vadd.f32 %v3649_v5, %v3621_v57  ;;  %v592_v8 = vadd.f32 %v3665_v6, %v311_v47 }
  0xe1   :  { %v345_v9 = vpop.f32.mrf.mxu1  ;;  %v514_v10 = vpop.f32.mrf.mxu0 }
  0xe2   :  { %v346_v11 = vadd.f32 %v345_v9, %v199_v60  ;;  %v591_v12 = vadd.f32 %v514_v10, %v306_v50 }
  0xe3   :  { %v3652_v13 = vpop.f32.mrf.mxu1  ;;  %v3668_v14 = vpop.f32.mrf.mxu0 }
  0xe4   :  { %v361_v15 = vadd.f32 %v3652_v13, %v3624_v63  ;;  %v594_v16 = vadd.f32 %v3668_v14, %v321_v53 }
  0xe5   :  { %v355_v17 = vpop.f32.mrf.mxu1  ;;  %v524_v18 = vpop.f32.mrf.mxu0 }
  0xe6   :  { %v356_v19 = vadd.f32 %v355_v17, %v209_v2  ;;  %v593_v20 = vadd.f32 %v524_v18, %v316_v56 }
  0xe7   :  { %v3655_v21 = vpop.f32.mrf.mxu1  ;;  %v3671_v22 = vpop.f32.mrf.mxu0 }
  0xe8   :  { %v371_v23 = vadd.f32 %v3655_v21, %v3627_v38  ;;  %v596_v24 = vadd.f32 %v3671_v22, %v331_v59 }
  0xe9   :  { %v365_v25 = vpop.f32.mrf.mxu1  ;;  %v534_v26 = vpop.f32.mrf.mxu0 }
  0xea   :  { %v366_v27 = vadd.f32 %v365_v25, %v219_v40  ;;  %v595_v29 = vadd.f32 %v534_v26, %v326_v62 }
  0xeb   :  { %v3658_v30 = vpop.f32.mrf.mxu1  ;;  %v3674_v35 = vpop.f32.mrf.mxu0 }
  0xec   :  { %v598_v36 = vadd.f32 %v3674_v35, %v341_v1 }
  0xed   :  { %v375_v37 = vpop.f32.mrf.mxu1  ;;  %v544_v39 = vpop.f32.mrf.mxu0 }
  0xee   :  { %v597_v41 = vadd.f32 %v544_v39, %v336_v4 }
  0xef   :  { %v3677_v42 = vpop.f32.mrf.mxu0  ;;  %v3693_v43 = vpop.f32.mrf.mxu1 }
  0xf0   :  { %v600_v44 = vadd.f32 %v3677_v42, %v351_v7  ;;  %v815_v45 = vadd.f32 %v3693_v43, %v592_v8  ;;  %v4573_v8 = vld [vmem:[%s5025_s5] ss:$0 sm:$0xff] }
  0xf1   :  { %v554_v46 = vpop.f32.mrf.mxu0  ;;  %v737_v47 = vpop.f32.mrf.mxu1 }
  0xf2   :  { %v599_v48 = vadd.f32 %v554_v46, %v346_v11  ;;  %v814_v49 = vadd.f32 %v737_v47, %v591_v12 }
  0xf3   :  { %v3680_v38 = vpop.f32.mrf.mxu0  ;;  %v3696_v50 = vpop.f32.mrf.mxu1 }
  0xf4   :  { %v602_v51 = vadd.f32 %v3680_v38, %v361_v15  ;;  %v817_v52 = vadd.f32 %v3696_v50, %v594_v16 }
  0xf5   :  { %v564_v40 = vpop.f32.mrf.mxu0  ;;  %v747_v53 = vpop.f32.mrf.mxu1 }
  0xf6   :  { %v601_v54 = vadd.f32 %v564_v40, %v356_v19  ;;  %v816_v55 = vadd.f32 %v747_v53, %v593_v20 }
  0xf7   :  { %v3683_v56 = vpop.f32.mrf.mxu0  ;;  %v3699_v57 = vpop.f32.mrf.mxu1 }
  0xf8   :  { %v604_v58 = vadd.f32 %v3683_v56, %v371_v23  ;;  %v819_v59 = vadd.f32 %v3699_v57, %v596_v24 }
  0xf9   :  { %v574_v60 = vpop.f32.mrf.mxu0  ;;  %v757_v61 = vpop.f32.mrf.mxu1 }
  0xfa   :  { %v603_v62 = vadd.f32 %v574_v60, %v366_v27  ;;  %v818_v63 = vadd.f32 %v757_v61, %v595_v29 }
  0xfb   :  { %v3686_v0 = vpop.f32.mrf.mxu0  ;;  %v3702_v1 = vpop.f32.mrf.mxu1 }
  0xfc   :  { %v821_v2 = vadd.f32 %v3702_v1, %v598_v36 }
  0xfd   :  { %v584_v3 = vpop.f32.mrf.mxu0  ;;  %v767_v4 = vpop.f32.mrf.mxu1 }
  0xfe   :  { %v820_v5 = vadd.f32 %v767_v4, %v597_v41 }
  0xff   :  { %v3705_v6 = vpop.f32.mrf.mxu1  ;;  %v3721_v7 = vpop.f32.mrf.mxu0 }
 0x100   :  { %v823_v9 = vadd.f32 %v3705_v6, %v600_v44  ;;  %v1038_v10 = vadd.f32 %v3721_v7, %v815_v45 }
 0x101   :  { %v777_v11 = vpop.f32.mrf.mxu1  ;;  %v960_v12 = vpop.f32.mrf.mxu0 }
 0x102   :  { %v1057_v13 = vadd.f32 %v4573_v8, %v1038_v10  ;;  %v822_v14 = vadd.f32 %v777_v11, %v599_v48  ;;  %v1037_v15 = vadd.f32 %v960_v12, %v814_v49 }
 0x103   :  { %v3708_v16 = vpop.f32.mrf.mxu1  ;;  %v3724_v17 = vpop.f32.mrf.mxu0 }
 0x104   :  { %v1056_v18 = vadd.f32 %v4573_v8, %v1037_v15  ;;  %v825_v19 = vadd.f32 %v3708_v16, %v602_v51  ;;  %v1040_v20 = vadd.f32 %v3724_v17, %v817_v52  ;;  %v1071_v23 = vmax.f32 %v1057_v13, 0.0 }
 0x105   :  { %v787_v21 = vpop.f32.mrf.mxu1  ;;  %v970_v22 = vpop.f32.mrf.mxu0 }
 0x106   :  { %v1070_v24 = vmax.f32 %v1056_v18, 0.0  ;;  %v824_v25 = vadd.f32 %v787_v21, %v601_v54  ;;  %v1039_v26 = vadd.f32 %v970_v22, %v816_v55  ;;  %v1059_v35 = vadd.f32 %v4573_v8, %v1040_v20 }
 0x107   :  { %v3711_v27 = vpop.f32.mrf.mxu1  ;;  %v3727_v29 = vpop.f32.mrf.mxu0 }
 0x108   :  { %v1086_v30 = vmax.f32 %v1070_v24, %v1071_v23  ;;  %v1058_v36 = vadd.f32 %v4573_v8, %v1039_v26  ;;  %v827_v37 = vadd.f32 %v3711_v27, %v604_v58  ;;  %v1042_v39 = vadd.f32 %v3727_v29, %v819_v59 }
 0x109   :  { %v797_v41 = vpop.f32.mrf.mxu1  ;;  %v980_v42 = vpop.f32.mrf.mxu0  ;;  %v1073_v49 = vmax.f32 %v1059_v35, 0.0  ;;  %v1084_v58 = vlaneseq }
 0x10a   :  { %v1072_v43 = vmax.f32 %v1058_v36, 0.0  ;;  %v826_v44 = vadd.f32 %v797_v41, %v603_v62  ;;  %v1041_v45 = vadd.f32 %v980_v42, %v818_v63  ;;  %v1061_v46 = vadd.f32 %v4573_v8, %v1042_v39 }
 0x10b   :  { %v3730_v47 = vpop.f32.mrf.mxu0  ;;  %v3714_v48 = vpop.f32.mrf.mxu1  ;;  %v1085_v6 = vand.u32 127, %v1084_v58 }
 0x10c   :  { %v1087_v38 = vmax.f32 %v1086_v30, %v1072_v43  ;;  %v1060_v50 = vadd.f32 %v4573_v8, %v1041_v45  ;;  %v1044_v51 = vadd.f32 %v3730_v47, %v821_v2  ;;  %v1075_v56 = vmax.f32 %v1061_v46, 0.0 }
 0x10d   :  { %v990_v52 = vpop.f32.mrf.mxu0  ;;  %v807_v40 = vpop.f32.mrf.mxu1  ;;  %vm1100_vm2 = vcmp.ge.s32.totalorder %v1085_v6, 8  ;;  %vm1101_vm3 = vcmp.lt.s32.totalorder %v1085_v6, 16  ;;  %vm1098_vm4 = vcmp.lt.s32.totalorder %v1085_v6, 8 }
 0x10e   :  { %v1074_v53 = vmax.f32 %v1060_v50, 0.0  ;;  %v1088_v54 = vmax.f32 %v1087_v38, %v1073_v49  ;;  %v1043_v55 = vadd.f32 %v990_v52, %v820_v5  ;;  %v1063_v60 = vadd.f32 %v4573_v8, %v1044_v51  ;;  %vm1102_vm5 = vmand %vm1100_vm2, %vm1101_vm3 }
 0x10f   :  { %v3733_v57 = vpop.f32.mrf.mxu0  ;;  %vm1103_vm6 = vmor %vm1098_vm4, %vm1102_vm5 }
 0x110   :  { %v1089_v59 = vmax.f32 %v1088_v54, %v1074_v53  ;;  %v1062_v61 = vadd.f32 %v4573_v8, %v1043_v55  ;;  %v1046_v62 = vadd.f32 %v3733_v57, %v823_v9  ;;  %v1077_v7 = vmax.f32 %v1063_v60, 0.0  ;;  %v4585_v9 = vpop.f32.mrf.mxu1 }
 0x111   :  { %v1000_v63 = vpop.f32.mrf.mxu0 }
 0x112   :  { %v1076_v0 = vmax.f32 %v1062_v61, 0.0  ;;  %v1090_v1 = vmax.f32 %v1089_v59, %v1075_v56  ;;  %v1045_v3 = vadd.f32 %v1000_v63, %v822_v14  ;;  %v1065_v2 = vadd.f32 %v4573_v8, %v1046_v62  ;;  %v1181_v30 = vpop.f32.mrf.mxu1 }
 0x113   :  { %v3736_v4 = vpop.f32.mrf.mxu0 }
 0x114   :  { %v1091_v10 = vmax.f32 %v1090_v1, %v1076_v0  ;;  %v1064_v5 = vadd.f32 %v4573_v8, %v1045_v3  ;;  %v1048_v11 = vadd.f32 %v3736_v4, %v825_v19  ;;  %v1079_v17 = vmax.f32 %v1065_v2, 0.0  ;;  %v4616_v63 = vpop.f32.mrf.mxu1 }
 0x115   :  { %v1010_v12 = vpop.f32.mrf.mxu0 }
 0x116   :  { %v1078_v13 = vmax.f32 %v1064_v5, 0.0  ;;  %v1092_v15 = vmax.f32 %v1091_v10, %v1077_v7  ;;  %v1047_v16 = vadd.f32 %v1010_v12, %v824_v25  ;;  %v1067_v20 = vadd.f32 %v4573_v8, %v1048_v11  ;;  %v4593_v25 = vld [vmem:[%s5025_s5 + $0x1] ss:$0 sm:$0xff]  ;;  %v1191_v0 = vpop.f32.mrf.mxu1 }
 0x117   :  { %v3739_v18 = vpop.f32.mrf.mxu0 }
 0x118   :  { %v1093_v14 = vmax.f32 %v1092_v15, %v1078_v13  ;;  %v1066_v21 = vadd.f32 %v4573_v8, %v1047_v16  ;;  %v1050_v22 = vadd.f32 %v3739_v18, %v827_v37  ;;  %v1081_v35 = vmax.f32 %v1067_v20, 0.0  ;;  %v4618_v1 = vpop.f32.mrf.mxu1 }
 0x119   :  { %v1020_v23 = vpop.f32.mrf.mxu0  ;;  %v1187_v16 = vadd.f32 %v4585_v9, %v4593_v25 }
 0x11a   :  { %v1080_v24 = vmax.f32 %v1066_v21, 0.0  ;;  %v1094_v19 = vmax.f32 %v1093_v14, %v1079_v17  ;;  %v1069_v26 = vadd.f32 %v4573_v8, %v1050_v22  ;;  %v1049_v27 = vadd.f32 %v1020_v23, %v826_v44  ;;  %v4620_v3 = vpop.f32.mrf.mxu1 }
 0x11b   :  { %v3742_v29 = vpop.f32.mrf.mxu0  ;;  %v1182_v44 = vadd.f32 %v4593_v25, %v1181_v30 }
 0x11c   :  { %v1095_v36 = vmax.f32 %v1094_v19, %v1080_v24  ;;  %v1068_v39 = vadd.f32 %v4573_v8, %v1049_v27  ;;  %v1083_v42 = vmax.f32 %v1069_v26, 0.0  ;;  %v4622_v2 = vpop.f32.mrf.mxu1 }
 0x11d   :  { %v1030_v37 = vpop.f32.mrf.mxu0 }
 0x11e   :  { %v1096_v41 = vmax.f32 %v1095_v36, %v1081_v35  ;;  %v1082_v43 = vmax.f32 %v1068_v39, 0.0  ;;  %v1106_v38 = vsel %vm1098_vm4, %v1083_v42, 0.0  ;;  %v4624_v4 = vpop.f32.mrf.mxu1  ;;  %v1192_v37 = vadd.f32 %v4593_v25, %v1191_v0 }
 0x11f   :  { %v1351_v45 = vpop.f32.mrf.mxu0 }
 0x120   :  { %v1104_v46 = vsel %vm1103_vm6, %v1082_v43, 0.0  ;;  %v1355_v47 = vadd.f32 %v1351_v45, %v1182_v44  ;;  %v4626_v6 = vpop.f32.mrf.mxu1 }
 0x121   :  { %v1105_v48 = vmax.f32 %v1096_v41, %v1104_v46  ;;  %v3781_v49 = vpop.f32.mrf.mxu0 }
 0x122   :  { %4020 = vtanh.f32 %v1355_v47  ;;  %v3348_v8 = vmul.f32 -1.442695, %v1355_v47  ;;  %v4628_v7 = vpop.f32.mrf.mxu1 }
 0x123   :  { %v4599_v50 = vmax.f32 %v1105_v48, %v1106_v38 }
 0x124   :  { %4022 = vpow2.f32 %v3348_v8  ;;  %v4630_v10 = vpop.f32.mrf.mxu1 }
 0x126   :  { %v4632_v5 = vpop.f32.mrf.mxu1 }
 0x128   :  { %v4634_v11 = vpop.f32.mrf.mxu1 }
 0x12a   :  { %v4636_v12 = vpop.f32.mrf.mxu1 }
 0x12c   :  { %v4638_v13 = vpop.f32.mrf.mxu1 }
 0x12e   :  { %v4640_v15 = vpop.f32.mrf.mxu1 }
 0x12f   :  { %v4021_v51 = vpop.eup %4020 }
 0x130   :  { %1365 = vrot.lane.b32.xlu0 %v4021_v51, %s4163_s24 }
 0x131   :  { %v4023_v52 = vpop.eup %4022 }
 0x132   :  { %v1359_v40 = vadd.f32 1.0, %v4023_v52 }
 0x134   :  { %4024 = vrcp.f32 %v1359_v40 }
 0x141   :  { %v4025_v53 = vpop.eup %4024 }
 0x142   :  { %v1363_v56 = vmul.f32 0.0, %v4025_v53 }
 0x1a2   :  { %v1366_v54 = vpop.permute.xlu0 %1365 }
 0x1a3   :  { %v1368_v55 = vmul.f32 %v4025_v53, %v1366_v54 }
 0x1a5   :  { %1370 = vrot.lane.b32.xlu0 %v1368_v55, %s4164_s25 }
 0x217   :  { %v1371_v57 = vpop.permute.xlu0 %1370 }
 0x218   :  { %v1373_v58 = vadd.f32 %v1371_v57, %v1363_v56  ;;  %v1197_v56 = vadd.f32 %v4616_v63, %v4593_v25 }
 0x21a   :  { %4026 = vtanh.f32 %v1373_v58 }
 0x227   :  { %v4027_v59 = vpop.eup %4026 }
 0x228   :  { %1376 = vrot.lane.b32.xlu1 %v4027_v59, %s4163_s24 }
 0x29a   :  { %v1377_v60 = vpop.permute.xlu1 %1376 }
 0x29b   :  { %v1379_v61 = vmul.f32 %v4025_v53, %v1377_v60 }
 0x29d   :  { %1382 = vrot.lane.b32.xlu1 %v1379_v61, %s4164_s25 }
 0x30f   :  { %v1383_v62 = vpop.permute.xlu1 %1382 }
 0x310   :  { %3791 = vmatmul.mubr.msk.f32.vlgmr.msra.gmra.mxu1 %vm1281_vm7, %v1383_v62 }
 0x311   :  { %3805 = vmatpush3.msra.mxu1 %v4445_v31  ;;  %3812 = vmatprep.mubr.msk.f32.mxu1 %vm4162_vm1, %v4161_v28 }
 0x312   :  { %3806 = vmatprep.subr.mxu1 %v4161_v28 }
 0x313   :  { %3807 = vmatpush3.msra.mxu1 %v4454_v32 }
 0x314   :  { %3808 = vmatprep.subr.mxu1 %v4161_v28 }
 0x315   :  { %3809 = vmatpush3.msra.mxu1 %v4470_v33 }
 0x316   :  { %3810 = vmatprep.subr.mxu1 %v4161_v28 }
 0x317   :  { %3811 = vmatpush3.msra.mxu1 %v4485_v34 }
 0x318   :  { %3826 = vmatprep.subr.mxu1 %v4161_v28 }
 0x3d0   :  { %v1452_v17 = vpop.f32.mrf.mxu1 }
 0x3d1   :  { %v1456_v18 = vadd.f32 %v1452_v17, %v1187_v16 }
 0x3d2   :  { %v3792_v14 = vpop.f32.mrf.mxu1 }
 0x3d3   :  { %4028 = vtanh.f32 %v1456_v18  ;;  %v3350_v21 = vmul.f32 -1.442695, %v1456_v18 }
 0x3d5   :  { %4030 = vpow2.f32 %v3350_v21 }
 0x3e0   :  { %v4029_v20 = vpop.eup %4028 }
 0x3e1   :  { %1466 = vrot.lane.b32.xlu0 %v4029_v20, %s4163_s24 }
 0x3e2   :  { %v4031_v22 = vpop.eup %4030 }
 0x3e3   :  { %v1460_v23 = vadd.f32 1.0, %v4031_v22 }
 0x3e5   :  { %4032 = vrcp.f32 %v1460_v23 }
 0x3f2   :  { %v4033_v24 = vpop.eup %4032 }
 0x3f3   :  { %v1464_v27 = vmul.f32 %v4033_v24, %v1373_v58 }
 0x453   :  { %v1467_v19 = vpop.permute.xlu0 %1466 }
 0x454   :  { %v1469_v26 = vmul.f32 %v4033_v24, %v1467_v19  ;;  %v1202_v19 = vadd.f32 %v4593_v25, %v4620_v3 }
 0x456   :  { %1471 = vrot.lane.b32.xlu1 %v1469_v26, %s4164_s25 }
 0x4c8   :  { %v1472_v29 = vpop.permute.xlu1 %1471 }
 0x4c9   :  { %v1474_v9 = vadd.f32 %v1472_v29, %v1464_v27 }
 0x4cb   :  { %4034 = vtanh.f32 %v1474_v9 }
 0x4d8   :  { %v4035_v30 = vpop.eup %4034 }
 0x4d9   :  { %1477 = vrot.lane.b32.xlu0 %v4035_v30, %s4163_s24 }
 0x54b   :  { %v1478_v35 = vpop.permute.xlu0 %1477 }
 0x54c   :  { %v1480_v36 = vmul.f32 %v4033_v24, %v1478_v35 }
 0x54e   :  { %1483 = vrot.lane.b32.xlu1 %v1480_v36, %s4164_s25 }
 0x5c0   :  { %v1484_v39 = vpop.permute.xlu1 %1483 }
 0x5c1   :  { %3802 = vmatmul.mubr.msk.f32.vlgmr.msra.gmra.mxu0 %vm1281_vm7, %v1484_v39 }
 0x5c2   :  { %3816 = vmatpush3.msra.mxu0 %v4445_v31  ;;  %3823 = vmatprep.mubr.msk.f32.mxu0 %vm4162_vm1, %v4161_v28 }
 0x5c3   :  { %3817 = vmatprep.subr.mxu0 %v4161_v28 }
 0x5c4   :  { %3818 = vmatpush3.msra.mxu0 %v4454_v32 }
 0x5c5   :  { %3819 = vmatprep.subr.mxu0 %v4161_v28 }
 0x5c6   :  { %3820 = vmatpush3.msra.mxu0 %v4470_v33 }
 0x5c7   :  { %3821 = vmatprep.subr.mxu0 %v4161_v28 }
 0x5c8   :  { %3822 = vmatpush3.msra.mxu0 %v4485_v34 }
 0x5c9   :  { %3837 = vmatprep.subr.mxu0 %v4161_v28 }
 0x681   :  { %v1553_v41 = vpop.f32.mrf.mxu0 }
 0x682   :  { %v1557_v42 = vadd.f32 %v1553_v41, %v1192_v37 }
 0x683   :  { %v3803_v43 = vpop.f32.mrf.mxu0 }
 0x684   :  { %4036 = vtanh.f32 %v1557_v42  ;;  %v3352_v45 = vmul.f32 -1.442695, %v1557_v42 }
 0x686   :  { %4038 = vpow2.f32 %v3352_v45 }
 0x691   :  { %v4037_v44 = vpop.eup %4036 }
 0x692   :  { %1567 = vrot.lane.b32.xlu0 %v4037_v44, %s4163_s24 }
 0x693   :  { %v4039_v46 = vpop.eup %4038 }
 0x694   :  { %v1561_v47 = vadd.f32 1.0, %v4039_v46 }
 0x696   :  { %4040 = vrcp.f32 %v1561_v47 }
 0x6a3   :  { %v4041_v48 = vpop.eup %4040 }
 0x6a4   :  { %v1565_v51 = vmul.f32 %v4041_v48, %v1474_v9 }
 0x704   :  { %v1568_v49 = vpop.permute.xlu0 %1567 }
 0x705   :  { %v1570_v38 = vmul.f32 %v4041_v48, %v1568_v49 }
 0x707   :  { %1572 = vrot.lane.b32.xlu1 %v1570_v38, %s4164_s25 }
 0x779   :  { %v1573_v8 = vpop.permute.xlu1 %1572 }
 0x77a   :  { %v1575_v52 = vadd.f32 %v1573_v8, %v1565_v51 }
 0x77c   :  { %4042 = vtanh.f32 %v1575_v52 }
 0x789   :  { %v4043_v40 = vpop.eup %4042 }
 0x78a   :  { %1578 = vrot.lane.b32.xlu0 %v4043_v40, %s4163_s24 }
 0x7fc   :  { %v1579_v53 = vpop.permute.xlu0 %1578 }
 0x7fd   :  { %v1581_v54 = vmul.f32 %v4041_v48, %v1579_v53  ;;  %v1207_v48 = vadd.f32 %v4618_v1, %v4593_v25 }
 0x7ff   :  { %1584 = vrot.lane.b32.xlu1 %v1581_v54, %s4164_s25 }
 0x871   :  { %v1585_v55 = vpop.permute.xlu1 %1584 }
 0x872   :  { %3813 = vmatmul.mubr.msk.f32.vlgmr.msra.gmra.mxu1 %vm1281_vm7, %v1585_v55 }
 0x873   :  { %3827 = vmatpush3.msra.mxu1 %v4445_v31  ;;  %3834 = vmatprep.mubr.msk.f32.mxu1 %vm4162_vm1, %v4161_v28 }
 0x874   :  { %3828 = vmatprep.subr.mxu1 %v4161_v28 }
 0x875   :  { %3829 = vmatpush3.msra.mxu1 %v4454_v32 }
 0x876   :  { %3830 = vmatprep.subr.mxu1 %v4161_v28 }
 0x877   :  { %3831 = vmatpush3.msra.mxu1 %v4470_v33 }
 0x878   :  { %3832 = vmatprep.subr.mxu1 %v4161_v28 }
 0x879   :  { %3833 = vmatpush3.msra.mxu1 %v4485_v34 }
 0x87a   :  { %3848 = vmatprep.subr.mxu1 %v4161_v28 }
 0x932   :  { %v1654_v57 = vpop.f32.mrf.mxu1 }
 0x933   :  { %v1658_v58 = vadd.f32 %v1654_v57, %v1197_v56 }
 0x934   :  { %v3814_v59 = vpop.f32.mrf.mxu1 }
 0x935   :  { %4044 = vtanh.f32 %v1658_v58  ;;  %v3354_v61 = vmul.f32 -1.442695, %v1658_v58 }
 0x937   :  { %4046 = vpow2.f32 %v3354_v61 }
 0x942   :  { %v4045_v60 = vpop.eup %4044 }
 0x943   :  { %1668 = vrot.lane.b32.xlu0 %v4045_v60, %s4163_s24 }
 0x944   :  { %v4047_v62 = vpop.eup %4046 }
 0x945   :  { %v1662_v0 = vadd.f32 1.0, %v4047_v62 }
 0x947   :  { %4048 = vrcp.f32 %v1662_v0 }
 0x954   :  { %v4049_v16 = vpop.eup %4048 }
 0x955   :  { %v1666_v14 = vmul.f32 %v4049_v16, %v1575_v52 }
 0x9b5   :  { %v1669_v17 = vpop.permute.xlu0 %1668 }
 0x9b6   :  { %v1671_v18 = vmul.f32 %v4049_v16, %v1669_v17 }
 0x9b8   :  { %1673 = vrot.lane.b32.xlu1 %v1671_v18, %s4164_s25 }
 0xa2a   :  { %v1674_v20 = vpop.permute.xlu1 %1673 }
 0xa2b   :  { %v1676_v63 = vadd.f32 %v1674_v20, %v1666_v14 }
 0xa2d   :  { %4050 = vtanh.f32 %v1676_v63 }
 0xa3a   :  { %v4051_v21 = vpop.eup %4050 }
 0xa3b   :  { %1679 = vrot.lane.b32.xlu0 %v4051_v21, %s4163_s24 }
 0xaad   :  { %v1680_v22 = vpop.permute.xlu0 %1679 }
 0xaae   :  { %v1682_v23 = vmul.f32 %v4049_v16, %v1680_v22 }
 0xab0   :  { %1685 = vrot.lane.b32.xlu1 %v1682_v23, %s4164_s25 }
 0xb22   :  { %v1686_v24 = vpop.permute.xlu1 %1685 }
 0xb23   :  { %3824 = vmatmul.mubr.msk.f32.vlgmr.msra.gmra.mxu0 %vm1281_vm7, %v1686_v24 }
 0xb24   :  { %3838 = vmatpush3.msra.mxu0 %v4445_v31  ;;  %3845 = vmatprep.mubr.msk.f32.mxu0 %vm4162_vm1, %v4161_v28 }
 0xb25   :  { %3839 = vmatprep.subr.mxu0 %v4161_v28 }
 0xb26   :  { %3840 = vmatpush3.msra.mxu0 %v4454_v32 }
 0xb27   :  { %3841 = vmatprep.subr.mxu0 %v4161_v28 }
 0xb28   :  { %3842 = vmatpush3.msra.mxu0 %v4470_v33 }
 0xb29   :  { %3843 = vmatprep.subr.mxu0 %v4161_v28 }
 0xb2a   :  { %3844 = vmatpush3.msra.mxu0 %v4485_v34 }
 0xb2b   :  { %3859 = vmatprep.subr.mxu0 %v4161_v28 }
 0xbe3   :  { %v1755_v26 = vpop.f32.mrf.mxu0 }
 0xbe4   :  { %v1759_v27 = vadd.f32 %v1755_v26, %v1202_v19 }
 0xbe5   :  { %v3825_v29 = vpop.f32.mrf.mxu0 }
 0xbe6   :  { %4052 = vtanh.f32 %v1759_v27  ;;  %v3356_v30 = vmul.f32 -1.442695, %v1759_v27  ;;  %v4736_v27 = vld [vmem:[%s5024_s3 + $0x18] sm:$0xff]  ;;  %v4745_v29 = vld [vmem:[%s5024_s3 + $0x10] sm:$0xff] }
 0xbe8   :  { %4054 = vpow2.f32 %v3356_v30  ;;  %v4759_v30 = vld [vmem:[%s5024_s3] sm:$0xff] }
 0xbf3   :  { %v4053_v9 = vpop.eup %4052 }
 0xbf4   :  { %1769 = vrot.lane.b32.xlu0 %v4053_v9, %s4163_s24  ;;  %v4752_v9 = vld [vmem:[%s5024_s3 + $0x8] sm:$0xff] }
 0xbf5   :  { %v4055_v35 = vpop.eup %4054 }
 0xbf6   :  { %v1763_v36 = vadd.f32 1.0, %v4055_v35  ;;  %v1217_v35 = vadd.f32 %v4622_v2, %v4593_v25 }
 0xbf8   :  { %4056 = vrcp.f32 %v1763_v36 }
 0xc05   :  { %v4057_v39 = vpop.eup %4056 }
 0xc06   :  { %v1767_v42 = vmul.f32 %v4057_v39, %v1676_v63 }
 0xc66   :  { %v1770_v37 = vpop.permute.xlu0 %1769 }
 0xc67   :  { %v1772_v41 = vmul.f32 %v4057_v39, %v1770_v37 }
 0xc69   :  { %1774 = vrot.lane.b32.xlu1 %v1772_v41, %s4164_s25 }
 0xcdb   :  { %v1775_v43 = vpop.permute.xlu1 %1774 }
 0xcdc   :  { %v1777_v3 = vadd.f32 %v1775_v43, %v1767_v42 }
 0xcde   :  { %4058 = vtanh.f32 %v1777_v3 }
 0xceb   :  { %v4059_v44 = vpop.eup %4058 }
 0xcec   :  { %1780 = vrot.lane.b32.xlu0 %v4059_v44, %s4163_s24 }
 0xd5e   :  { %v1781_v45 = vpop.permute.xlu0 %1780 }
 0xd5f   :  { %v1783_v46 = vmul.f32 %v4057_v39, %v1781_v45 }
 0xd61   :  { %1786 = vrot.lane.b32.xlu1 %v1783_v46, %s4164_s25 }
 0xdd3   :  { %v1787_v47 = vpop.permute.xlu1 %1786 }
 0xdd4   :  { %3835 = vmatmul.mubr.msk.f32.vlgmr.msra.gmra.mxu1 %vm1281_vm7, %v1787_v47 }
 0xdd5   :  { %3849 = vmatpush3.msra.mxu1 %v4445_v31  ;;  %3856 = vmatprep.mubr.msk.f32.mxu1 %vm4162_vm1, %v4161_v28 }
 0xdd6   :  { %3850 = vmatprep.subr.mxu1 %v4161_v28 }
 0xdd7   :  { %3851 = vmatpush3.msra.mxu1 %v4454_v32 }
 0xdd8   :  { %3852 = vmatprep.subr.mxu1 %v4161_v28 }
 0xdd9   :  { %3853 = vmatpush3.msra.mxu1 %v4470_v33 }
 0xdda   :  { %3854 = vmatprep.subr.mxu1 %v4161_v28 }
 0xddb   :  { %3855 = vmatpush3.msra.mxu1 %v4485_v34 }
 0xddc   :  { %3870 = vmatprep.subr.mxu1 %v4161_v28 }
 0xe94   :  { %v1856_v49 = vpop.f32.mrf.mxu1 }
 0xe95   :  { %v1860_v38 = vadd.f32 %v1856_v49, %v1207_v48 }
 0xe96   :  { %v3836_v51 = vpop.f32.mrf.mxu1 }
 0xe97   :  { %4060 = vtanh.f32 %v1860_v38  ;;  %v3358_v52 = vmul.f32 -1.442695, %v1860_v38 }
 0xe99   :  { %4062 = vpow2.f32 %v3358_v52  ;;  %v1222_v52 = vadd.f32 %v4593_v25, %v4628_v7 }
 0xea4   :  { %v4061_v8 = vpop.eup %4060 }
 0xea5   :  { %1870 = vrot.lane.b32.xlu0 %v4061_v8, %s4163_s24 }
 0xea6   :  { %v4063_v40 = vpop.eup %4062 }
 0xea7   :  { %v1864_v53 = vadd.f32 1.0, %v4063_v40 }
 0xea9   :  { %4064 = vrcp.f32 %v1864_v53 }
 0xeb6   :  { %v4065_v54 = vpop.eup %4064 }
 0xeb7   :  { %v1868_v57 = vmul.f32 %v4065_v54, %v1777_v3 }
 0xf17   :  { %v1871_v55 = vpop.permute.xlu0 %1870 }
 0xf18   :  { %v1873_v56 = vmul.f32 %v4065_v54, %v1871_v55 }
 0xf1a   :  { %1875 = vrot.lane.b32.xlu1 %v1873_v56, %s4164_s25 }
 0xf8c   :  { %v1876_v58 = vpop.permute.xlu1 %1875 }
 0xf8d   :  { %v1878_v1 = vadd.f32 %v1876_v58, %v1868_v57 }
 0xf8f   :  { %4066 = vtanh.f32 %v1878_v1 }
 0xf9c   :  { %v4067_v59 = vpop.eup %4066 }
 0xf9d   :  { %1881 = vrot.lane.b32.xlu0 %v4067_v59, %s4163_s24 }
0x100f   :  { %v1882_v60 = vpop.permute.xlu0 %1881 }
0x1010   :  { %v1884_v61 = vmul.f32 %v4065_v54, %v1882_v60 }
0x1012   :  { %1887 = vrot.lane.b32.xlu1 %v1884_v61, %s4164_s25 }
0x1084   :  { %v1888_v62 = vpop.permute.xlu1 %1887 }
0x1085   :  { %3846 = vmatmul.mubr.msk.f32.vlgmr.msra.gmra.mxu0 %vm1281_vm7, %v1888_v62 }
0x1086   :  { %3860 = vmatpush3.msra.mxu0 %v4445_v31  ;;  %3867 = vmatprep.mubr.msk.f32.mxu0 %vm4162_vm1, %v4161_v28  ;;  %v1212_v31 = vadd.f32 %v4593_v25, %v4624_v4 }
0x1087   :  { %3861 = vmatprep.subr.mxu0 %v4161_v28 }
0x1088   :  { %3862 = vmatpush3.msra.mxu0 %v4454_v32 }
0x1089   :  { %3863 = vmatprep.subr.mxu0 %v4161_v28 }
0x108a   :  { %3864 = vmatpush3.msra.mxu0 %v4470_v33 }
0x108b   :  { %3865 = vmatprep.subr.mxu0 %v4161_v28 }
0x108c   :  { %3866 = vmatpush3.msra.mxu0 %v4485_v34 }
0x108d   :  { %3881 = vmatprep.subr.mxu0 %v4161_v28 }
0x1145   :  { %v1957_v0 = vpop.f32.mrf.mxu0 }
0x1146   :  { %v1961_v16 = vadd.f32 %v1957_v0, %v1212_v31 }
0x1147   :  { %v3847_v17 = vpop.f32.mrf.mxu0 }
0x1148   :  { %4068 = vtanh.f32 %v1961_v16  ;;  %v3360_v32 = vmul.f32 -1.442695, %v1961_v16 }
0x114a   :  { %4070 = vpow2.f32 %v3360_v32 }
0x1155   :  { %v4069_v18 = vpop.eup %4068 }
0x1156   :  { %1971 = vrot.lane.b32.xlu0 %v4069_v18, %s4163_s24  ;;  %v1227_v18 = vadd.f32 %v4626_v6, %v4593_v25 }
0x1157   :  { %v4071_v14 = vpop.eup %4070 }
0x1158   :  { %v1965_v33 = vadd.f32 1.0, %v4071_v14 }
0x115a   :  { %4072 = vrcp.f32 %v1965_v33 }
0x1167   :  { %v4073_v20 = vpop.eup %4072 }
0x1168   :  { %v1969_v21 = vmul.f32 %v4073_v20, %v1878_v1 }
0x11c8   :  { %v1972_v63 = vpop.permute.xlu0 %1971 }
0x11c9   :  { %v1974_v34 = vmul.f32 %v4073_v20, %v1972_v63 }
0x11cb   :  { %1976 = vrot.lane.b32.xlu1 %v1974_v34, %s4164_s25 }
0x123d   :  { %v1977_v22 = vpop.permute.xlu1 %1976 }
0x123e   :  { %v1979_v4 = vadd.f32 %v1977_v22, %v1969_v21 }
0x1240   :  { %4074 = vtanh.f32 %v1979_v4 }
0x124d   :  { %v4075_v23 = vpop.eup %4074 }
0x124e   :  { %1982 = vrot.lane.b32.xlu0 %v4075_v23, %s4163_s24 }
0x12c0   :  { %v1983_v24 = vpop.permute.xlu0 %1982 }
0x12c1   :  { %v1985_v19 = vmul.f32 %v4073_v20, %v1983_v24 }
0x12c3   :  { %1988 = vrot.lane.b32.xlu1 %v1985_v19, %s4164_s25 }
0x1335   :  { %v1989_v26 = vpop.permute.xlu1 %1988 }
0x1336   :  { %3857 = vmatmul.mubr.msk.f32.vlgmr.msra.gmra.mxu1 %vm1281_vm7, %v1989_v26 }
0x1337   :  { %3871 = vmatpush3.msra.mxu1 %v4736_v27  ;;  %3878 = vmatprep.mubr.msk.f32.mxu1 %vm4162_vm1, %v4161_v28 }
0x1338   :  { %3872 = vmatprep.subr.mxu1 %v4161_v28 }
0x1339   :  { %3873 = vmatpush3.msra.mxu1 %v4745_v29 }
0x133a   :  { %3874 = vmatprep.subr.mxu1 %v4161_v28 }
0x133b   :  { %3875 = vmatpush3.msra.mxu1 %v4752_v9 }
0x133c   :  { %3876 = vmatprep.subr.mxu1 %v4161_v28 }
0x133d   :  { %3877 = vmatpush3.msra.mxu1 %v4759_v30 }
0x133e   :  { %3892 = vmatprep.subr.mxu1 %v4161_v28 }
0x13f6   :  { %v2058_v36 = vpop.f32.mrf.mxu1 }
0x13f7   :  { %v2062_v39 = vadd.f32 %v2058_v36, %v1217_v35 }
0x13f8   :  { %v3858_v37 = vpop.f32.mrf.mxu1 }
0x13f9   :  { %4076 = vtanh.f32 %v2062_v39  ;;  %v3362_v42 = vmul.f32 -1.442695, %v2062_v39  ;;  %v1232_v37 = vadd.f32 %v4593_v25, %v4632_v5 }
0x13fb   :  { %4078 = vpow2.f32 %v3362_v42 }
0x1406   :  { %v4077_v41 = vpop.eup %4076 }
0x1407   :  { %2072 = vrot.lane.b32.xlu0 %v4077_v41, %s4163_s24 }
0x1408   :  { %v4079_v43 = vpop.eup %4078 }
0x1409   :  { %v2066_v3 = vadd.f32 1.0, %v4079_v43 }
0x140b   :  { %4080 = vrcp.f32 %v2066_v3 }
0x1418   :  { %v4081_v44 = vpop.eup %4080 }
0x1419   :  { %v2070_v47 = vmul.f32 %v4081_v44, %v1979_v4 }
0x1479   :  { %v2073_v45 = vpop.permute.xlu0 %2072 }
0x147a   :  { %v2075_v46 = vmul.f32 %v4081_v44, %v2073_v45 }
0x147c   :  { %2077 = vrot.lane.b32.xlu1 %v2075_v46, %s4164_s25 }
0x14ee   :  { %v2078_v48 = vpop.permute.xlu1 %2077 }
0x14ef   :  { %v2080_v2 = vadd.f32 %v2078_v48, %v2070_v47 }
0x14f1   :  { %4082 = vtanh.f32 %v2080_v2 }
0x14fe   :  { %v4083_v49 = vpop.eup %4082 }
0x14ff   :  { %2083 = vrot.lane.b32.xlu0 %v4083_v49, %s4163_s24 }
0x1571   :  { %v2084_v38 = vpop.permute.xlu0 %2083 }
0x1572   :  { %v2086_v51 = vmul.f32 %v4081_v44, %v2084_v38 }
0x1574   :  { %2089 = vrot.lane.b32.xlu1 %v2086_v51, %s4164_s25 }
0x15e6   :  { %v2090_v8 = vpop.permute.xlu1 %2089 }
0x15e7   :  { %3868 = vmatmul.mubr.msk.f32.vlgmr.msra.gmra.mxu0 %vm1281_vm7, %v2090_v8 }
0x15e8   :  { %3882 = vmatpush3.msra.mxu0 %v4736_v27  ;;  %3889 = vmatprep.mubr.msk.f32.mxu0 %vm4162_vm1, %v4161_v28 }
0x15e9   :  { %3883 = vmatprep.subr.mxu0 %v4161_v28 }
0x15ea   :  { %3884 = vmatpush3.msra.mxu0 %v4745_v29 }
0x15eb   :  { %3885 = vmatprep.subr.mxu0 %v4161_v28 }
0x15ec   :  { %3886 = vmatpush3.msra.mxu0 %v4752_v9 }
0x15ed   :  { %3887 = vmatprep.subr.mxu0 %v4161_v28 }
0x15ee   :  { %3888 = vmatpush3.msra.mxu0 %v4759_v30 }
0x15ef   :  { %3903 = vmatprep.subr.mxu0 %v4161_v28 }
0x16a7   :  { %v2159_v40 = vpop.f32.mrf.mxu0 }
0x16a8   :  { %v2163_v53 = vadd.f32 %v2159_v40, %v1222_v52 }
0x16a9   :  { %v3869_v54 = vpop.f32.mrf.mxu0 }
0x16aa   :  { %4084 = vtanh.f32 %v2163_v53  ;;  %v3364_v56 = vmul.f32 -1.442695, %v2163_v53  ;;  %v1237_v53 = vadd.f32 %v4630_v10, %v4593_v25 }
0x16ac   :  { %4086 = vpow2.f32 %v3364_v56 }
0x16b7   :  { %v4085_v55 = vpop.eup %4084 }
0x16b8   :  { %2173 = vrot.lane.b32.xlu0 %v4085_v55, %s4163_s24 }
0x16b9   :  { %v4087_v57 = vpop.eup %4086 }
0x16ba   :  { %v2167_v58 = vadd.f32 1.0, %v4087_v57 }
0x16bc   :  { %4088 = vrcp.f32 %v2167_v58 }
0x16c9   :  { %v4089_v1 = vpop.eup %4088 }
0x16ca   :  { %v2171_v61 = vmul.f32 %v4089_v1, %v2080_v2 }
0x172a   :  { %v2174_v59 = vpop.permute.xlu0 %2173 }
0x172b   :  { %v2176_v60 = vmul.f32 %v4089_v1, %v2174_v59 }
0x172d   :  { %2178 = vrot.lane.b32.xlu1 %v2176_v60, %s4164_s25 }
0x179f   :  { %v2179_v62 = vpop.permute.xlu1 %2178 }
0x17a0   :  { %v2181_v7 = vadd.f32 %v2179_v62, %v2171_v61 }
0x17a2   :  { %4090 = vtanh.f32 %v2181_v7 }
0x17af   :  { %v4091_v31 = vpop.eup %4090 }
0x17b0   :  { %2184 = vrot.lane.b32.xlu0 %v4091_v31, %s4163_s24 }
0x1822   :  { %v2185_v0 = vpop.permute.xlu0 %2184 }
0x1823   :  { %v2187_v16 = vmul.f32 %v4089_v1, %v2185_v0 }
0x1825   :  { %2190 = vrot.lane.b32.xlu1 %v2187_v16, %s4164_s25 }
0x1897   :  { %v2191_v17 = vpop.permute.xlu1 %2190 }
0x1898   :  { %3879 = vmatmul.mubr.msk.f32.vlgmr.msra.gmra.mxu1 %vm1281_vm7, %v2191_v17 }
0x1899   :  { %3893 = vmatpush3.msra.mxu1 %v4736_v27  ;;  %3900 = vmatprep.mubr.msk.f32.mxu1 %vm4162_vm1, %v4161_v28 }
0x189a   :  { %3894 = vmatprep.subr.mxu1 %v4161_v28 }
0x189b   :  { %3895 = vmatpush3.msra.mxu1 %v4745_v29 }
0x189c   :  { %3896 = vmatprep.subr.mxu1 %v4161_v28 }
0x189d   :  { %3897 = vmatpush3.msra.mxu1 %v4752_v9 }
0x189e   :  { %3898 = vmatprep.subr.mxu1 %v4161_v28 }
0x189f   :  { %3899 = vmatpush3.msra.mxu1 %v4759_v30 }
0x18a0   :  { %3914 = vmatprep.subr.mxu1 %v4161_v28 }
0x1958   :  { %v2260_v32 = vpop.f32.mrf.mxu1 }
0x1959   :  { %v2264_v14 = vadd.f32 %v2260_v32, %v1227_v18  ;;  %v1242_v32 = vadd.f32 %v4593_v25, %v4636_v12 }
0x195a   :  { %v3880_v33 = vpop.f32.mrf.mxu1 }
0x195b   :  { %4092 = vtanh.f32 %v2264_v14  ;;  %v3366_v63 = vmul.f32 -1.442695, %v2264_v14 }
0x195d   :  { %4094 = vpow2.f32 %v3366_v63 }
0x1968   :  { %v4093_v20 = vpop.eup %4092 }
0x1969   :  { %2274 = vrot.lane.b32.xlu0 %v4093_v20, %s4163_s24 }
0x196a   :  { %v4095_v34 = vpop.eup %4094 }
0x196b   :  { %v2268_v21 = vadd.f32 1.0, %v4095_v34 }
0x196d   :  { %4096 = vrcp.f32 %v2268_v21 }
0x197a   :  { %v4097_v22 = vpop.eup %4096 }
0x197b   :  { %v2272_v24 = vmul.f32 %v4097_v22, %v2181_v7 }
0x19db   :  { %v2275_v4 = vpop.permute.xlu0 %2274 }
0x19dc   :  { %v2277_v23 = vmul.f32 %v4097_v22, %v2275_v4 }
0x19de   :  { %2279 = vrot.lane.b32.xlu1 %v2277_v23, %s4164_s25 }
0x1a50   :  { %v2280_v19 = vpop.permute.xlu1 %2279 }
0x1a51   :  { %v2282_v6 = vadd.f32 %v2280_v19, %v2272_v24 }
0x1a53   :  { %4098 = vtanh.f32 %v2282_v6 }
0x1a60   :  { %v4099_v26 = vpop.eup %4098 }
0x1a61   :  { %2285 = vrot.lane.b32.xlu0 %v4099_v26, %s4163_s24 }
0x1ad3   :  { %v2286_v35 = vpop.permute.xlu0 %2285 }
0x1ad4   :  { %v2288_v36 = vmul.f32 %v4097_v22, %v2286_v35 }
0x1ad6   :  { %2291 = vrot.lane.b32.xlu1 %v2288_v36, %s4164_s25 }
0x1b48   :  { %v2292_v39 = vpop.permute.xlu1 %2291 }
0x1b49   :  { %3890 = vmatmul.mubr.msk.f32.vlgmr.msra.gmra.mxu0 %vm1281_vm7, %v2292_v39 }
0x1b4a   :  { %3904 = vmatpush3.msra.mxu0 %v4736_v27  ;;  %3911 = vmatprep.mubr.msk.f32.mxu0 %vm4162_vm1, %v4161_v28 }
0x1b4b   :  { %3905 = vmatprep.subr.mxu0 %v4161_v28 }
0x1b4c   :  { %3906 = vmatpush3.msra.mxu0 %v4745_v29 }
0x1b4d   :  { %3907 = vmatprep.subr.mxu0 %v4161_v28 }
0x1b4e   :  { %3908 = vmatpush3.msra.mxu0 %v4752_v9 }
0x1b4f   :  { %3909 = vmatprep.subr.mxu0 %v4161_v28 }
0x1b50   :  { %3910 = vmatpush3.msra.mxu0 %v4759_v30 }
0x1b51   :  { %3925 = vmatprep.subr.mxu0 %v4161_v28 }
0x1c09   :  { %v2361_v41 = vpop.f32.mrf.mxu0 }
0x1c0a   :  { %v2365_v42 = vadd.f32 %v2361_v41, %v1232_v37 }
0x1c0b   :  { %v3891_v43 = vpop.f32.mrf.mxu0 }
0x1c0c   :  { %4100 = vtanh.f32 %v2365_v42  ;;  %v3368_v44 = vmul.f32 -1.442695, %v2365_v42 }
0x1c0e   :  { %4102 = vpow2.f32 %v3368_v44 }
0x1c19   :  { %v4101_v3 = vpop.eup %4100 }
0x1c1a   :  { %2375 = vrot.lane.b32.xlu0 %v4101_v3, %s4163_s24 }
0x1c1b   :  { %v4103_v45 = vpop.eup %4102 }
0x1c1c   :  { %v2369_v46 = vadd.f32 1.0, %v4103_v45 }
0x1c1e   :  { %4104 = vrcp.f32 %v2369_v46 }
0x1c2b   :  { %v4105_v47 = vpop.eup %4104 }
0x1c2c   :  { %v2373_v49 = vmul.f32 %v4105_v47, %v2282_v6 }
0x1c8c   :  { %v2376_v48 = vpop.permute.xlu0 %2375 }
0x1c8d   :  { %v2378_v2 = vmul.f32 %v4105_v47, %v2376_v48 }
0x1c8f   :  { %2380 = vrot.lane.b32.xlu1 %v2378_v2, %s4164_s25 }
0x1d01   :  { %v2381_v38 = vpop.permute.xlu1 %2380 }
0x1d02   :  { %v2383_v5 = vadd.f32 %v2381_v38, %v2373_v49  ;;  %v2897_v49 = vld [vmem:[%s5023_s2 + $0x18] sm:$0xff] }
0x1d04   :  { %4106 = vtanh.f32 %v2383_v5 }
0x1d11   :  { %v4107_v51 = vpop.eup %4106 }
0x1d12   :  { %2386 = vrot.lane.b32.xlu0 %v4107_v51, %s4163_s24  ;;  %v2895_v51 = vld [vmem:[%s5022_s0 + $0x78] sm:$0xff] }
0x1d84   :  { %v2387_v8 = vpop.permute.xlu0 %2386 }
0x1d85   :  { %v2389_v52 = vmul.f32 %v4105_v47, %v2387_v8  ;;  %v3009_v8 = vld [vmem:[%s5026_s4 + $0x78] sm:$0xff] }
0x1d87   :  { %2392 = vrot.lane.b32.xlu1 %v2389_v52, %s4164_s25  ;;  %v3008_v52 = vld [vmem:[%s5026_s4 + $0x70] sm:$0xff] }
0x1df9   :  { %v2393_v40 = vpop.permute.xlu1 %2392 }
0x1dfa   :  { %3901 = vmatmul.mubr.msk.f32.vlgmr.msra.gmra.mxu1 %vm1281_vm7, %v2393_v40  ;;  %v3007_v40 = vld [vmem:[%s5026_s4 + $0x68] sm:$0xff] }
0x1dfb   :  { %3915 = vmatpush3.msra.mxu1 %v4736_v27  ;;  %3922 = vmatprep.mubr.msk.f32.mxu1 %vm4162_vm1, %v4161_v28 }
0x1dfc   :  { %3916 = vmatprep.subr.mxu1 %v4161_v28 }
0x1dfd   :  { %3917 = vmatpush3.msra.mxu1 %v4745_v29 }
0x1dfe   :  { %3918 = vmatprep.subr.mxu1 %v4161_v28 }
0x1dff   :  { %3919 = vmatpush3.msra.mxu1 %v4752_v9 }
0x1e00   :  { %3920 = vmatprep.subr.mxu1 %v4161_v28 }
0x1e01   :  { %3921 = vmatpush3.msra.mxu1 %v4759_v30 }
0x1e02   :  { %3936 = vmatprep.subr.mxu1 %v4161_v28 }
0x1eba   :  { %v2462_v54 = vpop.f32.mrf.mxu1 }
0x1ebb   :  { %v2466_v55 = vadd.f32 %v2462_v54, %v1237_v53  ;;  %v3006_v53 = vld [vmem:[%s5026_s4 + $0x60] sm:$0xff]  ;;  %v3005_v54 = vld [vmem:[%s5026_s4 + $0x58] sm:$0xff] }
0x1ebc   :  { %v3902_v56 = vpop.f32.mrf.mxu1 }
0x1ebd   :  { %4108 = vtanh.f32 %v2466_v55  ;;  %v3370_v58 = vmul.f32 -1.442695, %v2466_v55  ;;  %v3004_v55 = vld [vmem:[%s5026_s4 + $0x50] sm:$0xff]  ;;  %v3003_v56 = vld [vmem:[%s5026_s4 + $0x48] sm:$0xff] }
0x1ebf   :  { %4110 = vpow2.f32 %v3370_v58  ;;  %v3001_v58 = vld [vmem:[%s5026_s4 + $0x38] sm:$0xff] }
0x1eca   :  { %v4109_v57 = vpop.eup %4108 }
0x1ecb   :  { %2476 = vrot.lane.b32.xlu0 %v4109_v57, %s4163_s24  ;;  %v3002_v57 = vld [vmem:[%s5026_s4 + $0x40] sm:$0xff] }
0x1ecc   :  { %v4111_v1 = vpop.eup %4110 }
0x1ecd   :  { %v2470_v59 = vadd.f32 1.0, %v4111_v1  ;;  %v3000_v1 = vld [vmem:[%s5026_s4 + $0x30] sm:$0xff] }
0x1ecf   :  { %4112 = vrcp.f32 %v2470_v59  ;;  %v2999_v59 = vld [vmem:[%s5026_s4 + $0x28] sm:$0xff] }
0x1edc   :  { %v4113_v60 = vpop.eup %4112 }
0x1edd   :  { %v2474_v7 = vmul.f32 %v4113_v60, %v2383_v5  ;;  %v2896_v5 = vld [vmem:[%s5023_s2 + $0x8] sm:$0xff] }
0x1f3d   :  { %v2477_v61 = vpop.permute.xlu0 %2476 }
0x1f3e   :  { %v2479_v62 = vmul.f32 %v4113_v60, %v2477_v61  ;;  %v2997_v61 = vld [vmem:[%s5026_s4 + $0x18] sm:$0xff] }
0x1f40   :  { %2481 = vrot.lane.b32.xlu1 %v2479_v62, %s4164_s25  ;;  %v2996_v62 = vld [vmem:[%s5026_s4 + $0x10] sm:$0xff] }
0x1fb2   :  { %v2482_v31 = vpop.permute.xlu1 %2481 }
0x1fb3   :  { %v2484_v10 = vadd.f32 %v2482_v31, %v2474_v7  ;;  %v2995_v7 = vld [vmem:[%s5026_s4 + $0x8] sm:$0xff]  ;;  %v2994_v31 = vld [vmem:[%s5026_s4] sm:$0xff] }
0x1fb5   :  { %4114 = vtanh.f32 %v2484_v10 }
0x1fc2   :  { %v4115_v0 = vpop.eup %4114 }
0x1fc3   :  { %2487 = vrot.lane.b32.xlu0 %v4115_v0, %s4163_s24 }
0x2035   :  { %v2488_v16 = vpop.permute.xlu0 %2487 }
0x2036   :  { %v2490_v17 = vmul.f32 %v4113_v60, %v2488_v16  ;;  %v2998_v60 = vld [vmem:[%s5026_s4 + $0x20] sm:$0xff] }
0x2038   :  { %2493 = vrot.lane.b32.xlu1 %v2490_v17, %s4164_s25 }
0x20aa   :  { %v2494_v18 = vpop.permute.xlu1 %2493 }
0x20ab   :  { %3912 = vmatmul.mubr.msk.f32.vlgmr.msra.gmra.mxu0 %vm1281_vm7, %v2494_v18 }
0x20ac   :  { %3926 = vmatpush3.msra.mxu0 %v4736_v27  ;;  %3933 = vmatprep.mubr.msk.f32.mxu0 %vm4162_vm1, %v4161_v28 }
0x20ad   :  { %3927 = vmatprep.subr.mxu0 %v4161_v28 }
0x20ae   :  { %3928 = vmatpush3.msra.mxu0 %v4745_v29 }
0x20af   :  { %3929 = vmatprep.subr.mxu0 %v4161_v28 }
0x20b0   :  { %3930 = vmatpush3.msra.mxu0 %v4752_v9 }
0x20b1   :  { %3931 = vmatprep.subr.mxu0 %v4161_v28 }
0x20b2   :  { %3932 = vmatpush3.msra.mxu0 %v4759_v30 }
0x20b3   :  { %3947 = vmatprep.subr.mxu0 %v4161_v28 }
0x216b   :  { %v2563_v14 = vpop.f32.mrf.mxu0 }
0x216c   :  { %v2567_v33 = vadd.f32 %v2563_v14, %v1242_v32 }
0x216d   :  { %v3913_v20 = vpop.f32.mrf.mxu0 }
0x216e   :  { %4116 = vtanh.f32 %v2567_v33  ;;  %v3372_v34 = vmul.f32 -1.442695, %v2567_v33 }
0x2170   :  { %4118 = vpow2.f32 %v3372_v34 }
0x217b   :  { %v4117_v63 = vpop.eup %4116 }
0x217c   :  { %2577 = vrot.lane.b32.xlu0 %v4117_v63, %s4163_s24 }
0x217d   :  { %v4119_v21 = vpop.eup %4118 }
0x217e   :  { %v2571_v22 = vadd.f32 1.0, %v4119_v21 }
0x2180   :  { %4120 = vrcp.f32 %v2571_v22 }
0x218d   :  { %v4121_v4 = vpop.eup %4120 }
0x218e   :  { %v2575_v19 = vmul.f32 %v4121_v4, %v2484_v10  ;;  %v4160_v10 = vld [vmem:[%s5025_s5 + $0x1] ss:$0 sm:$0xff] }
0x218f   :  { %v1252_v0 = vadd.f32 %v4160_v10, %v4640_v15 }
0x21ee   :  { %v2578_v23 = vpop.permute.xlu0 %2577 }
0x21ef   :  { %v2580_v24 = vmul.f32 %v4121_v4, %v2578_v23 }
0x21f1   :  { %2582 = vrot.lane.b32.xlu1 %v2580_v24, %s4164_s25 }
0x2263   :  { %v2583_v6 = vpop.permute.xlu1 %2582 }
0x2264   :  { %v2585_v12 = vadd.f32 %v2583_v6, %v2575_v19 }
0x2266   :  { %4122 = vtanh.f32 %v2585_v12 }
0x2273   :  { %v4123_v26 = vpop.eup %4122 }
0x2274   :  { %2588 = vrot.lane.b32.xlu0 %v4123_v26, %s4163_s24 }
0x22e6   :  { %v2589_v35 = vpop.permute.xlu0 %2588 }
0x22e7   :  { %v2591_v36 = vmul.f32 %v4121_v4, %v2589_v35 }
0x22e9   :  { %2594 = vrot.lane.b32.xlu1 %v2591_v36, %s4164_s25  ;;  %v3379_v36 = vld [vmem:[%s5025_s5 + $0x2] ss:$0 sm:$0xff] }
0x235b   :  { %v2595_v39 = vpop.permute.xlu1 %2594 }
0x235c   :  { %3923 = vmatmul.mubr.msk.f32.vlgmr.msra.gmra.mxu1 %vm1281_vm7, %v2595_v39  ;;  %v1257_v39 = vadd.f32 %v4160_v10, %v4638_v13 }
0x235d   :  { %3937 = vmatpush3.msra.mxu1 %v4736_v27  ;;  %3944 = vmatprep.mubr.msk.f32.mxu1 %vm4162_vm1, %v4161_v28  ;;  %v1247_v27 = vadd.f32 %v4634_v11, %v4593_v25 }
0x235e   :  { %3938 = vmatprep.subr.mxu1 %v4161_v28 }
0x235f   :  { %3939 = vmatpush3.msra.mxu1 %v4745_v29 }
0x2360   :  { %3940 = vmatprep.subr.mxu1 %v4161_v28 }
0x2361   :  { %3941 = vmatpush3.msra.mxu1 %v4752_v9 }
0x2362   :  { %3942 = vmatprep.subr.mxu1 %v4161_v28 }
0x2363   :  { %3943 = vmatpush3.msra.mxu1 %v4759_v30 }
0x2364   :  { %3954 = vmatprep.subr.mxu1 %v4161_v28 }
0x241c   :  { %v2664_v37 = vpop.f32.mrf.mxu1 }
0x241d   :  { %v2668_v41 = vadd.f32 %v2664_v37, %v1247_v27 }
0x241e   :  { %v3924_v42 = vpop.f32.mrf.mxu1 }
0x241f   :  { %4124 = vtanh.f32 %v2668_v41  ;;  %v3374_v29 = vmul.f32 -1.442695, %v2668_v41 }
0x2421   :  { %4126 = vpow2.f32 %v3374_v29 }
0x242c   :  { %v4125_v43 = vpop.eup %4124 }
0x242d   :  { %2678 = vrot.lane.b32.xlu0 %v4125_v43, %s4163_s24 }
0x242e   :  { %v4127_v3 = vpop.eup %4126 }
0x242f   :  { %v2672_v9 = vadd.f32 1.0, %v4127_v3 }
0x2431   :  { %4128 = vrcp.f32 %v2672_v9 }
0x243e   :  { %v4129_v44 = vpop.eup %4128 }
0x243f   :  { %v2676_v46 = vmul.f32 %v4129_v44, %v2585_v12 }
0x249f   :  { %v2679_v45 = vpop.permute.xlu0 %2678 }
0x24a0   :  { %v2681_v30 = vmul.f32 %v4129_v44, %v2679_v45 }
0x24a2   :  { %2683 = vrot.lane.b32.xlu1 %v2681_v30, %s4164_s25 }
0x2514   :  { %v2684_v47 = vpop.permute.xlu1 %2683 }
0x2515   :  { %v4869_v25 = vadd.f32 %v2684_v47, %v2676_v46 }
0x2517   :  { %4130 = vtanh.f32 %v4869_v25 }
0x2524   :  { %v4131_v11 = vpop.eup %4130 }
0x2525   :  { %2689 = vrot.lane.b32.xlu0 %v4131_v11, %s4163_s24 }
0x2597   :  { %v2690_v48 = vpop.permute.xlu0 %2689 }
0x2598   :  { %v2692_v2 = vmul.f32 %v4129_v44, %v2690_v48 }
0x259a   :  { %2695 = vrot.lane.b32.xlu1 %v2692_v2, %s4164_s25 }
0x260c   :  { %v2696_v38 = vpop.permute.xlu1 %2695 }
0x260d   :  { %3934 = vmatmul.mubr.msk.f32.vlgmr.msra.gmra.mxu0 %vm1281_vm7, %v2696_v38 }
0x260e   :  { %3948 = vmatpush3.msra.mxu0 %v2897_v49  ;;  %3951 = vmatprep.mubr.msk.f32.mxu0 %vm4162_vm1, %v4161_v28 }
0x260f   :  { %3949 = vmatprep.subr.mxu0 %v4161_v28 }
0x2610   :  { %3950 = vmatpush3.msra.mxu0 %v2896_v5 }
0x2611   :  { %3965 = vmatprep.subr.mxu0 %v4161_v28  ;;  %3952 = vmatmul.mubr.msk.f32.vlgmr.msra.gmra.mxu0 %vm44_vm0, %v2895_v51 }
0x2612   :  { %3966 = vmatpush3.msra.mxu0 %v3009_v8  ;;  %3997 = vmatprep.mubr.msk.f32.mxu0 %vm4162_vm1, %v4161_v28  ;;  %v3013_v8 = vld [vmem:[%s5026_s4 + $0x98] sm:$0xff] }
0x2613   :  { %3967 = vmatprep.subr.mxu0 %v4161_v28 }
0x2614   :  { %3968 = vmatpush3.msra.mxu0 %v3008_v52  ;;  %v3012_v52 = vld [vmem:[%s5026_s4 + $0x90] sm:$0xff] }
0x2615   :  { %3969 = vmatprep.subr.mxu0 %v4161_v28 }
0x2616   :  { %3970 = vmatpush3.msra.mxu0 %v3007_v40  ;;  %v3011_v40 = vld [vmem:[%s5026_s4 + $0x88] sm:$0xff] }
0x2617   :  { %3971 = vmatprep.subr.mxu0 %v4161_v28 }
0x2618   :  { %3972 = vmatpush3.msra.mxu0 %v3006_v53  ;;  %v3010_v53 = vld [vmem:[%s5026_s4 + $0x80] sm:$0xff] }
0x2619   :  { %3973 = vmatprep.subr.mxu0 %v4161_v28 }
0x261a   :  { %3974 = vmatpush3.msra.mxu0 %v3005_v54 }
0x261b   :  { %3975 = vmatprep.subr.mxu0 %v4161_v28 }
0x261c   :  { %3976 = vmatpush3.msra.mxu0 %v3004_v55 }
0x261d   :  { %3977 = vmatprep.subr.mxu0 %v4161_v28 }
0x261e   :  { %3978 = vmatpush3.msra.mxu0 %v3003_v56 }
0x261f   :  { %3979 = vmatprep.subr.mxu0 %v4161_v28 }
0x2620   :  { %3980 = vmatpush3.msra.mxu0 %v3002_v57 }
0x2621   :  { %3981 = vmatprep.subr.mxu0 %v4161_v28 }
0x2622   :  { %3982 = vmatpush3.msra.mxu0 %v3001_v58 }
0x2623   :  { %3983 = vmatprep.subr.mxu0 %v4161_v28 }
0x2624   :  { %3984 = vmatpush3.msra.mxu0 %v3000_v1  ;;  %v3162_v1 = vld [vmem:[%s5026_s4 + $0xb8] sm:$0xff] }
0x2625   :  { %3985 = vmatprep.subr.mxu0 %v4161_v28 }
0x2626   :  { %3986 = vmatpush3.msra.mxu0 %v2999_v59 }
0x2627   :  { %3987 = vmatprep.subr.mxu0 %v4161_v28 }
0x2628   :  { %3988 = vmatpush3.msra.mxu0 %v2998_v60  ;;  %v3161_v60 = vld [vmem:[%s5026_s4 + $0xb0] sm:$0xff] }
0x2629   :  { %3989 = vmatprep.subr.mxu0 %v4161_v28 }
0x262a   :  { %3990 = vmatpush3.msra.mxu0 %v2997_v61  ;;  %v3160_v61 = vld [vmem:[%s5026_s4 + $0xa8] sm:$0xff] }
0x262b   :  { %3991 = vmatprep.subr.mxu0 %v4161_v28 }
0x262c   :  { %3992 = vmatpush3.msra.mxu0 %v2996_v62  ;;  %v3159_v62 = vld [vmem:[%s5026_s4 + $0xa0] sm:$0xff] }
0x262d   :  { %3993 = vmatprep.subr.mxu0 %v4161_v28 }
0x262e   :  { %3994 = vmatpush3.msra.mxu0 %v2995_v7 }
0x262f   :  { %3995 = vmatprep.subr.mxu0 %v4161_v28 }
0x2630   :  { %3996 = vmatpush3.msra.mxu0 %v2994_v31 }
0x2631   :  { %3998 = vmatmul.mubr.f32.vlgmr.msra.gmra.mxu0 %v4599_v50 }
0x26cd   :  { %v2765_v16 = vpop.f32.mrf.mxu0 }
0x26ce   :  { %v2769_v17 = vadd.f32 %v2765_v16, %v1252_v0 }
0x26cf   :  { %v3935_v18 = vpop.f32.mrf.mxu0 }
0x26d0   :  { %4132 = vtanh.f32 %v2769_v17  ;;  %v3376_v34 = vmul.f32 -1.442695, %v2769_v17  ;;  %v3384_v17 = vld [vmem:[%s5025_s5 + $0x3] ss:$0 sm:$0xff] }
0x26d1   :  { %v2972_v32 = vpop.f32.mrf.mxu0 }
0x26d2   :  { %4134 = vpow2.f32 %v3376_v34  ;;  %v2973_v37 = vadd.f32 %v3379_v36, %v2972_v32 }
0x26d3   :  { %v3953_v14 = vpop.f32.mrf.mxu0 }
0x26d4   :  { %v3381_v9 = vmul.f32 -1.442695, %v2973_v37 }
0x26dd   :  { %v4133_v33 = vpop.eup %4132 }
0x26de   :  { %2779 = vrot.lane.b32.xlu0 %v4133_v33, %s4163_s24 }
0x26df   :  { %v4135_v50 = vpop.eup %4134 }
0x26e0   :  { %v2773_v21 = vadd.f32 1.0, %v4135_v50 }
0x26e2   :  { %4136 = vrcp.f32 %v2773_v21 }
0x26ef   :  { %v4137_v22 = vpop.eup %4136 }
0x26f0   :  { %v2777_v23 = vmul.f32 %v4137_v22, %v4869_v25 }
0x26f1   :  { %v4960_v20 = vpop.f32.mrf.mxu0 }
0x26f3   :  { %v3999_v63 = vpop.f32.mrf.mxu0 }
0x2750   :  { %v2780_v4 = vpop.permute.xlu0 %2779 }
0x2751   :  { %v2782_v15 = vmul.f32 %v4137_v22, %v2780_v4 }
0x2753   :  { %2784 = vrot.lane.b32.xlu1 %v2782_v15, %s4164_s25 }
0x27c5   :  { %v2785_v24 = vpop.permute.xlu1 %2784 }
0x27c6   :  { %v2787_v19 = vadd.f32 %v2785_v24, %v2777_v23 }
0x27c8   :  { %4138 = vtanh.f32 %v2787_v19 }
0x27d5   :  { %v4139_v6 = vpop.eup %4138 }
0x27d6   :  { %2790 = vrot.lane.b32.xlu0 %v4139_v6, %s4163_s24 }
0x2848   :  { %v2791_v12 = vpop.permute.xlu0 %2790 }
0x2849   :  { %v2793_v26 = vmul.f32 %v4137_v22, %v2791_v12 }
0x284b   :  { %2796 = vrot.lane.b32.xlu1 %v2793_v26, %s4164_s25 }
0x28bd   :  { %v2797_v35 = vpop.permute.xlu1 %2796 }
0x28be   :  { %3945 = vmatmul.mubr.msk.f32.vlgmr.msra.gmra.mxu1 %vm1281_vm7, %v2797_v35 }
0x28bf   :  { %3962 = vmatprep.mubr.msk.f32.mxu1 %vm4162_vm1, %v4161_v28  ;;  %3955 = vmatpush3.msra.mxu1 %v3013_v8 }
0x28c0   :  { %3956 = vmatprep.subr.mxu1 %v4161_v28 }
0x28c1   :  { %3957 = vmatpush3.msra.mxu1 %v3012_v52 }
0x28c2   :  { %3958 = vmatprep.subr.mxu1 %v4161_v28 }
0x28c3   :  { %3959 = vmatpush3.msra.mxu1 %v3011_v40 }
0x28c4   :  { %3960 = vmatprep.subr.mxu1 %v4161_v28 }
0x28c5   :  { %3961 = vmatpush3.msra.mxu1 %v3010_v53 }
0x28c6   :  { %4000 = vmatprep.subr.mxu1 %v4161_v28 }
0x297e   :  { %v2866_v27 = vpop.f32.mrf.mxu1 }
0x297f   :  { %v2870_v41 = vadd.f32 %v2866_v27, %v1257_v39 }
0x2980   :  { %v3946_v42 = vpop.f32.mrf.mxu1 }
0x2981   :  { %4140 = vtanh.f32 %v2870_v41  ;;  %v3378_v3 = vmul.f32 -1.442695, %v2870_v41 }
0x2982   :  { %4142 = vtanh.f32 %v2973_v37 }
0x2983   :  { %4144 = vpow2.f32 %v3378_v3 }
0x2984   :  { %4146 = vpow2.f32 %v3381_v9 }
0x298e   :  { %v4141_v43 = vpop.eup %4140 }
0x298f   :  { %2880 = vrot.lane.b32.xlu0 %v4141_v43, %s4163_s24  ;;  %v4143_v29 = vpop.eup %4142 }
0x2990   :  { %v4145_v44 = vpop.eup %4144 }
0x2991   :  { %v4147_v45 = vpop.eup %4146  ;;  %v2874_v30 = vadd.f32 1.0, %v4145_v44 }
0x2992   :  { %v2979_v13 = vadd.f32 1.0, %v4147_v45 }
0x2993   :  { %2984 = vrot.lane.b32.xlu0 %v4143_v29, %s4163_s24  ;;  %4148 = vrcp.f32 %v2874_v30 }
0x2994   :  { %4150 = vrcp.f32 %v2979_v13 }
0x29a0   :  { %v4149_v46 = vpop.eup %4148 }
0x29a1   :  { %v4151_v11 = vpop.eup %4150  ;;  %v2878_v38 = vmul.f32 %v4149_v46, %v2787_v19 }
0x2a01   :  { %v2881_v47 = vpop.permute.xlu0 %2880 }
0x2a02   :  { %v2883_v25 = vmul.f32 %v4149_v46, %v2881_v47 }
0x2a04   :  { %2885 = vrot.lane.b32.xlu1 %v2883_v25, %s4164_s25 }
0x2a05   :  { %v2985_v48 = vpop.permute.xlu0 %2984 }
0x2a06   :  { %v2987_v2 = vmul.f32 %v4151_v11, %v2985_v48 }
0x2a08   :  { %4152 = vtanh.f32 %v2987_v2 }
0x2a15   :  { %v4153_v49 = vpop.eup %4152 }
0x2a16   :  { %2990 = vrot.lane.b32.xlu0 %v4153_v49, %s4165_s22 }
0x2a76   :  { %v2886_v5 = vpop.permute.xlu1 %2885 }
0x2a77   :  { %v2888_v51 = vadd.f32 %v2886_v5, %v2878_v38 }
0x2a79   :  { %4154 = vtanh.f32 %v2888_v51 }
0x2a86   :  { %v4155_v54 = vpop.eup %4154 }
0x2a87   :  { %2891 = vrot.lane.b32.xlu1 %v4155_v54, %s4163_s24 }
0x2a88   :  { %v2991_v55 = vpop.permute.xlu0 %2990 }
0x2a89   :  { %v2993_v56 = vmul.f32 %v4151_v11, %v2991_v55 }
0x2a8b   :  { %3164 = vrot.lane.b32.xlu0 %v2993_v56, %s4164_s25 }
0x2af9   :  { %v2892_v57 = vpop.permute.xlu1 %2891 }
0x2afa   :  { %v2894_v58 = vmul.f32 %v4149_v46, %v2892_v57 }
0x2afc   :  { %3015 = vrot.lane.b32.xlu1 %v2894_v58, %s4164_s25 }
0x2afd   :  { %v3165_v7 = vpop.permute.xlu0 %3164 }
0x2b6e   :  { %v3016_v59 = vpop.permute.xlu1 %3015 }
0x2b6f   :  { %3963 = vmatmul.mubr.msk.f32.vlgmr.msra.gmra.mxu1 %vm1281_vm7, %v3016_v59 }
0x2b70   :  { %4001 = vmatpush3.msra.mxu1 %v3162_v1  ;;  %4008 = vmatprep.mubr.msk.f32.mxu1 %vm4162_vm1, %v4161_v28 }
0x2b71   :  { %4002 = vmatprep.subr.mxu1 %v4161_v28 }
0x2b72   :  { %4003 = vmatpush3.msra.mxu1 %v3161_v60 }
0x2b73   :  { %4004 = vmatprep.subr.mxu1 %v4161_v28 }
0x2b74   :  { %4005 = vmatpush3.msra.mxu1 %v3160_v61 }
0x2b75   :  { %4006 = vmatprep.subr.mxu1 %v4161_v28 }
0x2b76   :  { %4007 = vmatpush3.msra.mxu1 %v3159_v62 }
0x2b77   :  { %4009 = vmatmul.mubr.msk.f32.vlgmr.msra.gmra.mxu1 %vm1281_vm7, %v3165_v7 }
0x2c2f   :  { %v3085_v31 = vpop.f32.mrf.mxu1 }
0x2c30   :  { %v3156_v0 = vadd.f32 %v4960_v20, %v3085_v31 }
0x2c31   :  { %v3964_v10 = vpop.f32.mrf.mxu1 }
0x2c37   :  { %v3234_v16 = vpop.f32.mrf.mxu1 }
0x2c38   :  { %v3238_v18 = vadd.f32 %v3234_v16, %v3156_v0 }
0x2c39   :  { %v4010_v32 = vpop.f32.mrf.mxu1 }
0x2c3a   :  { %v3244_v14 = vadd.f32 %v3384_v17, %v3238_v18 }
0x2c3c   :  { %3245 = vst [vmem:[%s5027_s6] sm:$0xff] %v3244_v14 }

</bundles_post_ra>
